<compile_context>
chip_gen: v6e
topology: v6e:2x2x1
jax: 0.10.0
libtpu: 0.0.40
codegen_flags: <defaults>
</compile_context>

<pallas_src>
import functools
import math

import jax
import jax.numpy as jnp
from jax.experimental import pallas as pl
from jax.experimental.pallas import tpu as pltpu


# ----------------------------------------------------------------------------
# helpers
# ----------------------------------------------------------------------------

def _vmem_limit(block_bytes, scratch_bytes=0):
    """Scoped-VMEM limit derived from the actual buffers (double-buffered blocks) + headroom."""
    est = 2 * block_bytes + scratch_bytes
    return int(min(max(2 * est, 16 * 1024 * 1024), 64 * 1024 * 1024))


def _choose_lstm_chunk(B, KF, H, T, vmem_budget=8 * 1024 * 1024):
    """Budget-derived LSTM time chunk (conservative budget works on v5e/v6e/v7x)."""
    # per-timestep bytes: dbl-buffered bf16 x_win + dbl f32 out + dbl f32 mask + f32 gate scratch
    per_t = B * (2 * KF * 2 + 2 * H * 4 + 2 * 4 + 4 * H * 4)
    chunk = vmem_budget // max(per_t, 1)
    chunk = max(8, min(256, chunk))
    chunk = min(chunk, ((T + 7) // 8) * 8)
    return max(8, (chunk // 8) * 8)


# ----------------------------------------------------------------------------
# Kernel 1: fused (causal depthwise conv -> LSTM input projection -> LSTM recurrence)
# ----------------------------------------------------------------------------

def lstm_kernel(x_ref, mask_ref, wg_ref, bg_ref, whh_ref, o_ref,
                gates_ref, h_ref, c_ref, *, chunk):
    """x_ref   : (Bb, chunk, K*F) bf16 tap-window input (conv taps concatenated along features)
       mask_ref: (Bb, chunk, 1)  f32 validity mask (t < length[b])
       wg_ref  : (K*F, 4H) bf16 fused conv+input-projection weight, gate order (i, f, o, g)
       bg_ref  : (1, 4H)  f32,  whh_ref: (H, 4H) f32 (gate order (i, f, o, g))
       o_ref   : (Bb, chunk, H) f32 batch-major output block
       gates_ref/h_ref/c_ref: VMEM scratch (chunk gates / hidden / cell carries)."""
    ci = pl.program_id(1)

    @pl.when(ci == 0)
    def _init():
        h_ref[...] = jnp.zeros_like(h_ref)
        c_ref[...] = jnp.zeros_like(c_ref)

    Bb = o_ref.shape[0]
    H = o_ref.shape[2]

    # Chunk-wide input projection hoisted out of the recurrence (bf16 MXU matmul, conv folded in).
    for j in range(Bb):  # Bb is tiny and static
        gates_ref[j] = (jnp.dot(x_ref[j], wg_ref[...],
                                preferred_element_type=jnp.float32) + bg_ref[...])

    def step(s, carry):
        gx = gates_ref[:, pl.ds(s, 1), :].reshape(Bb, 4 * H)            # (Bb, 4H)
        # h @ W_hh kept f32: tiny, latency-bound; bf16 would only add recurrent rounding drift.
        g = gx + jnp.dot(h_ref[...], whh_ref[...],
                         preferred_element_type=jnp.float32)
        sig = jax.nn.sigmoid(g[:, :3 * H])                              # (i, f, o) in one EUP pass
        i_g = sig[:, :H]
        f_g = sig[:, H:2 * H]
        o_g = sig[:, 2 * H:]
        g_g = jnp.tanh(g[:, 3 * H:])
        c_new = f_g * c_ref[...] + i_g * g_g
        h_new = o_g * jnp.tanh(c_new)
        c_ref[...] = c_new
        h_ref[...] = h_new
        m = mask_ref[:, pl.ds(s, 1), :].reshape(Bb, 1)                  # (Bb, 1)
        o_ref[:, pl.ds(s, 1), :] = (h_new * m).reshape(Bb, 1, H)
        return carry

    jax.lax.fori_loop(0, chunk, step, 0, unroll=min(chunk, 8))


def lstm_forward(x_win, mask, w_gates, b_gates, whh_t, *, chunk):
    """x_win: (B, T_pad, K*F) bf16; mask: (B, T_pad, 1) f32 -> (B, T_pad, H) f32 (zero past lengths)."""
    B, T_pad, KF = x_win.shape
    H = whh_t.shape[0]
    G = 4 * H
    n_bs = 2 if (B % 2 == 0 and B > 1) else 1   # batch-split parallel axis (2nd TC on v7x)
    Bb = B // n_bs
    n_chunks = T_pad // chunk

    block_bytes = (Bb * chunk * KF * 2 + Bb * chunk * 4 + KF * G * 2
                   + G * 4 + H * G * 4 + Bb * chunk * H * 4)
    scratch_bytes = Bb * chunk * G * 4 + 2 * Bb * H * 4

    return pl.pallas_call(
        functools.partial(lstm_kernel, chunk=chunk),
        grid=(n_bs, n_chunks),
        in_specs=[
            pl.BlockSpec((Bb, chunk, KF), lambda p, c: (p, c, 0)),
            pl.BlockSpec((Bb, chunk, 1), lambda p, c: (p, c, 0)),
            pl.BlockSpec((KF, G), lambda p, c: (0, 0)),
            pl.BlockSpec((1, G), lambda p, c: (0, 0)),
            pl.BlockSpec((H, G), lambda p, c: (0, 0)),
        ],
        out_specs=pl.BlockSpec((Bb, chunk, H), lambda p, c: (p, c, 0)),
        out_shape=jax.ShapeDtypeStruct((B, T_pad, H), jnp.float32),
        scratch_shapes=[pltpu.VMEM((Bb, chunk, G), jnp.float32),
                        pltpu.VMEM((Bb, H), jnp.float32),
                        pltpu.VMEM((Bb, H), jnp.float32)],
        compiler_params=pltpu.CompilerParams(
            dimension_semantics=("parallel", "arbitrary"),
            vmem_limit_bytes=_vmem_limit(block_bytes, scratch_bytes)),
    )(x_win, mask, w_gates, b_gates, whh_t)


# ----------------------------------------------------------------------------
# Kernel 2: fully fused CausalInformerBlock (per batch element)
# ----------------------------------------------------------------------------

def informer_kernel(x_ref, sel_ref, wqkv_ref, bqkv_ref, wo_ref, bo_ref,
                    ln1g_ref, ln1b_ref, w1_ref, b1_ref, w2_ref, b2_ref,
                    ln2g_ref, ln2b_ref, o_ref, attn_ref, *, n_heads, scale, eps):
    """QKV proj -> per-head causal attention masked by the precomputed ProbSparse top-u selection
    -> out-proj -> add+LN1 -> FFN(ReLU) -> add+LN2, on one (T, D) slab per batch element."""
    x = x_ref[0]                                                # (T, D) f32
    T, D = x.shape
    hd = D // n_heads
    xb = x.astype(jnp.bfloat16)

    qkv = (jnp.dot(xb, wqkv_ref[...], preferred_element_type=jnp.float32)
           + bqkv_ref[...])                                     # (T, 3D) f32
    q = qkv[:, :D]
    k = qkv[:, D:2 * D]
    v = qkv[:, 2 * D:]
    sel = sel_ref[0]                                            # (T, n_heads) f32

    row = jax.lax.broadcasted_iota(jnp.int32, (T, T), 0)
    col = jax.lax.broadcasted_iota(jnp.int32, (T, T), 1)
    causal = col <= row

    for h in range(n_heads):
        qh = q[:, h * hd:(h + 1) * hd].astype(jnp.bfloat16)
        kh = k[:, h * hd:(h + 1) * hd].astype(jnp.bfloat16)
        vh = v[:, h * hd:(h + 1) * hd].astype(jnp.bfloat16)

        s = jax.lax.dot_general(qh, kh, (((1,), (1,)), ((), ())),
                                preferred_element_type=jnp.float32) * scale   # (T, T)
        s = jnp.where(causal, s, -1e30)           # single select; exp underflows masked entries to 0
        m = jnp.max(s, axis=-1, keepdims=True)
        e = jnp.exp(s - m)
        p_attn = e / jnp.sum(e, axis=-1, keepdims=True)         # exact divide (torch.softmax parity)
        oh = jnp.dot(p_attn.astype(jnp.bfloat16), vh,
                     preferred_element_type=jnp.float32)        # (T, hd)
        # zero unselected query rows (ProbSparse), write head slice into VMEM scratch (no concat)
        attn_ref[:, h * hd:(h + 1) * hd] = oh * sel[:, h:h + 1]

    attn = attn_ref[...].astype(jnp.bfloat16)
    proj = (jnp.dot(attn, wo_ref[...], preferred_element_type=jnp.float32)
            + bo_ref[...])
    z1 = x + proj
    mu1 = jnp.mean(z1, axis=-1, keepdims=True)
    var1 = jnp.mean(jnp.square(z1 - mu1), axis=-1, keepdims=True)
    x1 = (z1 - mu1) * jax.lax.rsqrt(var1 + eps) * ln1g_ref[...] + ln1b_ref[...]

    hid = jnp.maximum(
        jnp.dot(x1.astype(jnp.bfloat16), w1_ref[...],
                preferred_element_type=jnp.float32) + b1_ref[...], 0.0)
    y = (jnp.dot(hid.astype(jnp.bfloat16), w2_ref[...],
                 preferred_element_type=jnp.float32) + b2_ref[...])
    z2 = x1 + y
    mu2 = jnp.mean(z2, axis=-1, keepdims=True)
    var2 = jnp.mean(jnp.square(z2 - mu2), axis=-1, keepdims=True)
    x2 = (z2 - mu2) * jax.lax.rsqrt(var2 + eps) * ln2g_ref[...] + ln2b_ref[...]

    o_ref[0] = x2.astype(o_ref.dtype)


def informer_block(x, sel, p, n_heads):
    B, T, D = x.shape
    nh = n_heads
    hd = D // nh
    scale = hd ** (-0.5)
    kernel = functools.partial(informer_kernel, n_heads=nh, scale=scale, eps=1e-5)

    def cvec(d):
        return pl.BlockSpec((1, d), lambda b: (0, 0))

    block_bytes = (T * D * 4 + T * nh * 4 + D * 3 * D * 2 + 3 * D * 4 + D * D * 2
                   + 4 * D * 4 + D * 4 * D * 2 + 4 * D * 4 + 4 * D * D * 2
                   + 5 * D * 4 + T * D * 4)
    return pl.pallas_call(
        kernel,
        grid=(B,),
        in_specs=[
            pl.BlockSpec((1, T, D), lambda b: (b, 0, 0)),
            pl.BlockSpec((1, T, nh), lambda b: (b, 0, 0)),
            pl.BlockSpec((D, 3 * D), lambda b: (0, 0)),
            pl.BlockSpec((1, 3 * D), lambda b: (0, 0)),
            pl.BlockSpec((D, D), lambda b: (0, 0)),
            cvec(D), cvec(D), cvec(D),
            pl.BlockSpec((D, 4 * D), lambda b: (0, 0)),
            cvec(4 * D),
            pl.BlockSpec((4 * D, D), lambda b: (0, 0)),
            cvec(D), cvec(D), cvec(D),
        ],
        out_specs=pl.BlockSpec((1, T, D), lambda b: (b, 0, 0)),
        out_shape=jax.ShapeDtypeStruct((B, T, D), jnp.float32),
        scratch_shapes=[pltpu.VMEM((T, D), jnp.float32)],
        compiler_params=pltpu.CompilerParams(
            dimension_semantics=("parallel",),
            vmem_limit_bytes=_vmem_limit(block_bytes, T * D * 4)),
    )(x, sel, p["wqkv"], p["bqkv"], p["wo_t"], p["bo"],
      p["ln1_g"], p["ln1_b"], p["w1_t"], p["b1"], p["w2_t"], p["b2"],
      p["ln2_g"], p["ln2_b"])


# ----------------------------------------------------------------------------
# ProbSparse top-u query selection (exact top-k, computed once outside the fused kernel)
# ----------------------------------------------------------------------------

def _topu_select_mask(h, wq_bf16, bq, n_heads, u):
    """Returns (B, T, n_heads) f32 mask: 1 for queries in the top-u by per-head L1 norm."""
    B, T, D = h.shape
    hd = D // n_heads
    if u >= T:
        return jnp.ones((B, T, n_heads), jnp.float32)
    q = (jnp.dot(h.astype(jnp.bfloat16).reshape(B * T, D), wq_bf16,
                 preferred_element_type=jnp.float32).reshape(B, T, D) + bq)
    qn = jnp.sum(jnp.abs(q.reshape(B, T, n_heads, hd)), axis=-1)        # (B, T, nh)
    idx = jax.lax.top_k(jnp.transpose(qn, (0, 2, 1)), u)[1]             # (B, nh, u)
    sel = jnp.sum(jax.nn.one_hot(idx, T, dtype=jnp.float32), axis=2)    # (B, nh, T)
    return jnp.transpose(sel, (0, 2, 1))                                # (B, T, nh)


# ----------------------------------------------------------------------------
# Forward pass
# ----------------------------------------------------------------------------

def encoder_forward(params, x, lengths, n_heads, t_out):
    """x: (B, T, n_features); lengths: (B,) int32; t_out: STATIC int = max(lengths).
    Returns (B, t_out, embedding_dim)."""
    B, T, F = x.shape
    w_gates = params["w_gates"]
    K = w_gates.shape[0] // F
    H = params["whh_t"].shape[0]

    chunk = _choose_lstm_chunk(B, K * F, H, T)
    T_pad = ((T + chunk - 1) // chunk) * chunk

    # Causal conv windows folded into the gate projection: build tiny (B, T_pad, K*F) tap tensor.
    xr = x if T_pad == T else jnp.pad(x, ((0, 0), (0, T_pad - T), (0, 0)))
    xp = jnp.pad(xr, ((0, 0), (K - 1, 0), (0, 0)))                      # causal left pad
    x_win = jnp.concatenate([xp[:, k:k + T_pad, :] for k in range(K)],
                            axis=-1).astype(jnp.bfloat16)               # (B, T_pad, K*F)

    t_idx = jnp.arange(T_pad, dtype=jnp.int32)[None, :, None]
    mask = (t_idx < lengths.astype(jnp.int32)[:, None, None]).astype(jnp.float32)  # (B, T_pad, 1)

    h_full = lstm_forward(x_win, mask, w_gates, params["b_gates"],
                          params["whh_t"], chunk=chunk)                 # (B, T_pad, H)
    h = h_full[:, :t_out, :]                                            # pad_packed_sequence truncation

    inf = params["informer"]
    D = H
    u = min(int(5 * math.log(t_out)), t_out)                            # ProbSparse u (factor=5)
    sel = _topu_select_mask(h, inf["wqkv"][:, :D], inf["bqkv"][:, :D], n_heads, u)
    return informer_block(h, sel, inf, n_heads)


# ----------------------------------------------------------------------------
# Parameters: PyTorch-layout init + one-time fused / pre-transposed / bf16 preparation
# ----------------------------------------------------------------------------

def init_params(key, n_features, embedding_dim):
    E = embedding_dim
    ks = jax.random.split(key, 16)

    def lin(k, out_d, in_d):
        kw, kb = jax.random.split(k)
        return (jax.random.normal(kw, (out_d, in_d), jnp.float32) * 0.1,
                jax.random.normal(kb, (out_d,), jnp.float32) * 0.01)

    q_w, q_b = lin(ks[0], E, E)
    k_w, k_b = lin(ks[1], E, E)
    v_w, v_b = lin(ks[2], E, E)
    o_w, o_b = lin(ks[3], E, E)
    f1_w, f1_b = lin(ks[4], 4 * E, E)
    f2_w, f2_b = lin(ks[5], E, 4 * E)

    return {
        "conv_w": jax.random.normal(ks[6], (n_features, 1, 3), jnp.float32) * 0.3,
        "lstm_w_ih": jax.random.normal(ks[7], (4 * E, n_features), jnp.float32) * 0.1,
        "lstm_w_hh": jax.random.normal(ks[8], (4 * E, E), jnp.float32) * 0.1,
        "lstm_b_ih": jax.random.normal(ks[9], (4 * E,), jnp.float32) * 0.01,
        "lstm_b_hh": jax.random.normal(ks[10], (4 * E,), jnp.float32) * 0.01,
        "informer": {
            "q_w": q_w, "q_b": q_b, "k_w": k_w, "k_b": k_b,
            "v_w": v_w, "v_b": v_b, "o_w": o_w, "o_b": o_b,
            "ln1_g": jnp.ones((E,), jnp.float32), "ln1_b": jnp.zeros((E,), jnp.float32),
            "ffn_w1": f1_w, "ffn_b1": f1_b, "ffn_w2": f2_w, "ffn_b2": f2_b,
            "ln2_g": jnp.ones((E,), jnp.float32), "ln2_b": jnp.zeros((E,), jnp.float32),
        },
    }


def prepare_params(p):
    """One-time weight fusion / pre-transposition / bf16 cast (no per-call transposes)."""
    bf16, f32 = jnp.bfloat16, jnp.float32
    conv_w = p["conv_w"]                                   # (F, 1, K), bias=False in the reference
    F, _, K = conv_w.shape
    H = p["lstm_w_hh"].shape[1]

    # reorder gate columns (i, f, g, o) -> (i, f, o, g): one contiguous sigmoid slice + one tanh
    perm = jnp.concatenate([jnp.arange(0, 2 * H), jnp.arange(3 * H, 4 * H),
                            jnp.arange(2 * H, 3 * H)])
    w_ih_t = p["lstm_w_ih"].T[:, perm]                     # (F, 4H)
    whh_t = p["lstm_w_hh"].T[:, perm]                      # (H, 4H)
    b_gates = (p["lstm_b_ih"] + p["lstm_b_hh"])[perm].reshape(1, 4 * H)
    # fold conv tap k into the input projection, concatenate taps along the contraction dim
    w_gates = jnp.concatenate([conv_w[:, 0, k][:, None] * w_ih_t for k in range(K)], axis=0)

    inf = p["informer"]
    D = inf["q_w"].shape[0]
    wqkv = jnp.concatenate([inf["q_w"].T, inf["k_w"].T, inf["v_w"].T], axis=1)   # (D, 3D)
    bqkv = jnp.concatenate([inf["q_b"], inf["k_b"], inf["v_b"]]).reshape(1, 3 * D)
    return {
        "w_gates": w_gates.astype(bf16),
        "b_gates": b_gates.astype(f32),
        "whh_t": whh_t.astype(f32),
        "informer": {
            "wqkv": wqkv.astype(bf16), "bqkv": bqkv.astype(f32),
            "wo_t": inf["o_w"].T.astype(bf16), "bo": inf["o_b"].reshape(1, D).astype(f32),
            "ln1_g": inf["ln1_g"].reshape(1, D).astype(f32),
            "ln1_b": inf["ln1_b"].reshape(1, D).astype(f32),
            "w1_t": inf["ffn_w1"].T.astype(bf16), "b1": inf["ffn_b1"].reshape(1, 4 * D).astype(f32),
            "w2_t": inf["ffn_w2"].T.astype(bf16), "b2": inf["ffn_b2"].reshape(1, D).astype(f32),
            "ln2_g": inf["ln2_g"].reshape(1, D).astype(f32),
            "ln2_b": inf["ln2_b"].reshape(1, D).astype(f32),
        },
    }


if __name__ == "__main__":
    B, T, N_FEATURES, EMBED_DIM, N_HEADS = 2, 8, 4, 32, 4

    key = jax.random.PRNGKey(0)
    kx, kp = jax.random.split(key)
    x = jax.random.normal(kx, (B, T, N_FEATURES), jnp.float32)
    lengths = jnp.array([8, 6], dtype=jnp.int32)

    params = prepare_params(init_params(kp, N_FEATURES, EMBED_DIM))

    # pad_packed_sequence pads to max(lengths); resolved ONCE outside the jitted forward
    t_out = int(jnp.max(lengths))

    fwd = jax.jit(encoder_forward, static_argnums=(3, 4))
    out = fwd(params, x, lengths, N_HEADS, t_out)
    out = jax.block_until_ready(out)

    assert out.shape == (B, t_out, EMBED_DIM)
    assert bool(jnp.all(jnp.isfinite(out)))
    print("KERNEL_OK")
</pallas_src>

<mosaic_0001>
module attributes {stable_mosaic.version = 11 : i64} {
  func.func @informer_kernel(%arg0: i32, %arg1: memref<1x8x32xf32, #tpu.memory_space<vmem>>, %arg2: memref<1x8x4xf32, #tpu.memory_space<vmem>>, %arg3: memref<32x96xbf16, #tpu.memory_space<vmem>>, %arg4: memref<1x96xf32, #tpu.memory_space<vmem>>, %arg5: memref<32x32xbf16, #tpu.memory_space<vmem>>, %arg6: memref<1x32xf32, #tpu.memory_space<vmem>>, %arg7: memref<1x32xf32, #tpu.memory_space<vmem>>, %arg8: memref<1x32xf32, #tpu.memory_space<vmem>>, %arg9: memref<32x128xbf16, #tpu.memory_space<vmem>>, %arg10: memref<1x128xf32, #tpu.memory_space<vmem>>, %arg11: memref<128x32xbf16, #tpu.memory_space<vmem>>, %arg12: memref<1x32xf32, #tpu.memory_space<vmem>>, %arg13: memref<1x32xf32, #tpu.memory_space<vmem>>, %arg14: memref<1x32xf32, #tpu.memory_space<vmem>>, %arg15: memref<1x8x32xf32, #tpu.memory_space<vmem>>, %arg16: memref<8x32xf32, #tpu.memory_space<vmem>>) attributes {dimension_semantics = [#tpu.dimension_semantics<parallel>], iteration_bounds = array<i64: 2>, scalar_prefetch = 0 : i64, scratch_operands = 1 : i64, tpu.core_type = #tpu.core_type<tc>, window_params = [{transform_indices = @transform_0, window_bounds = array<i64: 1, 8, 32>}, {transform_indices = @transform_1, window_bounds = array<i64: 1, 8, 4>}, {pipeline_mode = #tpu.pipeline_mode<synchronous>, transform_indices = @transform_2, window_bounds = array<i64: 32, 96>}, {pipeline_mode = #tpu.pipeline_mode<synchronous>, transform_indices = @transform_3, window_bounds = array<i64: 1, 96>}, {pipeline_mode = #tpu.pipeline_mode<synchronous>, transform_indices = @transform_4, window_bounds = array<i64: 32, 32>}, {pipeline_mode = #tpu.pipeline_mode<synchronous>, transform_indices = @transform_5, window_bounds = array<i64: 1, 32>}, {pipeline_mode = #tpu.pipeline_mode<synchronous>, transform_indices = @transform_6, window_bounds = array<i64: 1, 32>}, {pipeline_mode = #tpu.pipeline_mode<synchronous>, transform_indices = @transform_7, window_bounds = array<i64: 1, 32>}, {pipeline_mode = #tpu.pipeline_mode<synchronous>, transform_indices = @transform_8, window_bounds = array<i64: 32, 128>}, {pipeline_mode = #tpu.pipeline_mode<synchronous>, transform_indices = @transform_9, window_bounds = array<i64: 1, 128>}, {pipeline_mode = #tpu.pipeline_mode<synchronous>, transform_indices = @transform_10, window_bounds = array<i64: 128, 32>}, {pipeline_mode = #tpu.pipeline_mode<synchronous>, transform_indices = @transform_11, window_bounds = array<i64: 1, 32>}, {pipeline_mode = #tpu.pipeline_mode<synchronous>, transform_indices = @transform_12, window_bounds = array<i64: 1, 32>}, {pipeline_mode = #tpu.pipeline_mode<synchronous>, transform_indices = @transform_13, window_bounds = array<i64: 1, 32>}, {transform_indices = @transform_14, window_bounds = array<i64: 1, 8, 32>}]} {
    %c0 = arith.constant 0 : index
    %c0_0 = arith.constant 0 : index
    %c0_1 = arith.constant 0 : index
    %0 = vector.load %arg1[%c0, %c0_0, %c0_1] : memref<1x8x32xf32, #tpu.memory_space<vmem>>, vector<1x8x32xf32>
    %1 = vector.shape_cast %0 : vector<1x8x32xf32> to vector<8x32xf32>
    %2 = arith.truncf %1 : vector<8x32xf32> to vector<8x32xbf16>
    %c0_2 = arith.constant 0 : index
    %c0_3 = arith.constant 0 : index
    %3 = vector.load %arg3[%c0_2, %c0_3] : memref<32x96xbf16, #tpu.memory_space<vmem>>, vector<32x96xbf16>
    %cst = arith.constant dense<0.000000e+00> : vector<8x96xf32>
    %4 = tpu.matmul %2, %3, %cst {dimension_numbers = #tpu.dot_dimension_numbers<[1], [0], [0], [1], [0, 0, 1, 1], [], []>} : vector<8x32xbf16>, vector<32x96xbf16>, vector<8x96xf32> -> vector<8x96xf32>
    %c0_4 = arith.constant 0 : index
    %c0_5 = arith.constant 0 : index
    %5 = vector.load %arg4[%c0_4, %c0_5] : memref<1x96xf32, #tpu.memory_space<vmem>>, vector<1x96xf32>
    %6 = vector.broadcast %5 : vector<1x96xf32> to vector<8x96xf32>
    %7 = arith.addf %4, %6 : vector<8x96xf32>
    %8 = vector.extract_strided_slice %7 {offsets = [0, 0], sizes = [8, 32], strides = [1, 1]} : vector<8x96xf32> to vector<8x32xf32>
    %9 = vector.extract_strided_slice %7 {offsets = [0, 32], sizes = [8, 32], strides = [1, 1]} : vector<8x96xf32> to vector<8x32xf32>
    %10 = vector.extract_strided_slice %7 {offsets = [0, 64], sizes = [8, 32], strides = [1, 1]} : vector<8x96xf32> to vector<8x32xf32>
    %c0_6 = arith.constant 0 : index
    %c0_7 = arith.constant 0 : index
    %c0_8 = arith.constant 0 : index
    %11 = vector.load %arg2[%c0_6, %c0_7, %c0_8] : memref<1x8x4xf32, #tpu.memory_space<vmem>>, vector<1x8x4xf32>
    %12 = vector.shape_cast %11 : vector<1x8x4xf32> to vector<8x4xf32>
    %13 = tpu.iota {dimensions = array<i32: 0>} : vector<8x8xi32>
    %14 = tpu.iota {dimensions = array<i32: 1>} : vector<8x8xi32>
    %15 = arith.cmpi sle, %14, %13 : vector<8x8xi32>
    %16 = vector.extract_strided_slice %8 {offsets = [0, 0], sizes = [8, 8], strides = [1, 1]} : vector<8x32xf32> to vector<8x8xf32>
    %17 = arith.truncf %16 : vector<8x8xf32> to vector<8x8xbf16>
    %18 = vector.extract_strided_slice %9 {offsets = [0, 0], sizes = [8, 8], strides = [1, 1]} : vector<8x32xf32> to vector<8x8xf32>
    %19 = arith.truncf %18 : vector<8x8xf32> to vector<8x8xbf16>
    %20 = vector.extract_strided_slice %10 {offsets = [0, 0], sizes = [8, 8], strides = [1, 1]} : vector<8x32xf32> to vector<8x8xf32>
    %21 = arith.truncf %20 : vector<8x8xf32> to vector<8x8xbf16>
    %cst_9 = arith.constant dense<0.000000e+00> : vector<8x8xf32>
    %22 = tpu.matmul %17, %19, %cst_9 {dimension_numbers = #tpu.dot_dimension_numbers<[1], [1], [0], [0], [0, 0, 1, 0], [], []>} : vector<8x8xbf16>, vector<8x8xbf16>, vector<8x8xf32> -> vector<8x8xf32>
    %cst_10 = arith.constant 0.353553385 : f32
    %23 = vector.broadcast %cst_10 : f32 to vector<8x8xf32>
    %24 = arith.mulf %22, %23 : vector<8x8xf32>
    %cst_11 = arith.constant -1.000000e+30 : f32
    %25 = vector.broadcast %cst_11 : f32 to vector<8x8xf32>
    %26 = arith.select %15, %24, %25 : vector<8x8xi1>, vector<8x8xf32>
    %cst_12 = arith.constant dense<0xFF800000> : vector<8xf32>
    %27 = vector.multi_reduction <maximumf>, %26, %cst_12 [1] : vector<8x8xf32> to vector<8xf32>
    %28 = vector.shape_cast %27 : vector<8xf32> to vector<8x1xf32>
    %29 = vector.broadcast %28 : vector<8x1xf32> to vector<8x8xf32>
    %30 = arith.subf %26, %29 : vector<8x8xf32>
    %31 = math.exp %30 : vector<8x8xf32>
    %cst_13 = arith.constant dense<0.000000e+00> : vector<8xf32>
    %32 = vector.multi_reduction <add>, %31, %cst_13 [1] : vector<8x8xf32> to vector<8xf32>
    %33 = vector.shape_cast %32 : vector<8xf32> to vector<8x1xf32>
    %34 = vector.broadcast %33 : vector<8x1xf32> to vector<8x8xf32>
    %35 = arith.divf %31, %34 : vector<8x8xf32>
    %36 = arith.truncf %35 : vector<8x8xf32> to vector<8x8xbf16>
    %cst_14 = arith.constant dense<0.000000e+00> : vector<8x8xf32>
    %37 = tpu.matmul %36, %21, %cst_14 {dimension_numbers = #tpu.dot_dimension_numbers<[1], [0], [0], [1], [0, 0, 1, 1], [], []>} : vector<8x8xbf16>, vector<8x8xbf16>, vector<8x8xf32> -> vector<8x8xf32>
    %38 = vector.extract_strided_slice %12 {offsets = [0, 0], sizes = [8, 1], strides = [1, 1]} : vector<8x4xf32> to vector<8x1xf32>
    %39 = vector.broadcast %38 : vector<8x1xf32> to vector<8x8xf32>
    %40 = arith.mulf %37, %39 : vector<8x8xf32>
    %c0_15 = arith.constant 0 : index
    %c0_16 = arith.constant 0 : index
    %41 = vector.load %arg16[%c0_15, %c0_16] : memref<8x32xf32, #tpu.memory_space<vmem>>, vector<8x8xf32>
    tpu.vector_store %arg16[%c0_15, %c0_16], %40 {strides = array<i32>} : memref<8x32xf32, #tpu.memory_space<vmem>>, vector<8x8xf32>,
    %42 = vector.extract_strided_slice %8 {offsets = [0, 8], sizes = [8, 8], strides = [1, 1]} : vector<8x32xf32> to vector<8x8xf32>
    %43 = arith.truncf %42 : vector<8x8xf32> to vector<8x8xbf16>
    %44 = vector.extract_strided_slice %9 {offsets = [0, 8], sizes = [8, 8], strides = [1, 1]} : vector<8x32xf32> to vector<8x8xf32>
    %45 = arith.truncf %44 : vector<8x8xf32> to vector<8x8xbf16>
    %46 = vector.extract_strided_slice %10 {offsets = [0, 8], sizes = [8, 8], strides = [1, 1]} : vector<8x32xf32> to vector<8x8xf32>
    %47 = arith.truncf %46 : vector<8x8xf32> to vector<8x8xbf16>
    %cst_17 = arith.constant dense<0.000000e+00> : vector<8x8xf32>
    %48 = tpu.matmul %43, %45, %cst_17 {dimension_numbers = #tpu.dot_dimension_numbers<[1], [1], [0], [0], [0, 0, 1, 0], [], []>} : vector<8x8xbf16>, vector<8x8xbf16>, vector<8x8xf32> -> vector<8x8xf32>
    %cst_18 = arith.constant 0.353553385 : f32
    %49 = vector.broadcast %cst_18 : f32 to vector<8x8xf32>
    %50 = arith.mulf %48, %49 : vector<8x8xf32>
    %cst_19 = arith.constant -1.000000e+30 : f32
    %51 = vector.broadcast %cst_19 : f32 to vector<8x8xf32>
    %52 = arith.select %15, %50, %51 : vector<8x8xi1>, vector<8x8xf32>
    %cst_20 = arith.constant dense<0xFF800000> : vector<8xf32>
    %53 = vector.multi_reduction <maximumf>, %52, %cst_20 [1] : vector<8x8xf32> to vector<8xf32>
    %54 = vector.shape_cast %53 : vector<8xf32> to vector<8x1xf32>
    %55 = vector.broadcast %54 : vector<8x1xf32> to vector<8x8xf32>
    %56 = arith.subf %52, %55 : vector<8x8xf32>
    %57 = math.exp %56 : vector<8x8xf32>
    %cst_21 = arith.constant dense<0.000000e+00> : vector<8xf32>
    %58 = vector.multi_reduction <add>, %57, %cst_21 [1] : vector<8x8xf32> to vector<8xf32>
    %59 = vector.shape_cast %58 : vector<8xf32> to vector<8x1xf32>
    %60 = vector.broadcast %59 : vector<8x1xf32> to vector<8x8xf32>
    %61 = arith.divf %57, %60 : vector<8x8xf32>
    %62 = arith.truncf %61 : vector<8x8xf32> to vector<8x8xbf16>
    %cst_22 = arith.constant dense<0.000000e+00> : vector<8x8xf32>
    %63 = tpu.matmul %62, %47, %cst_22 {dimension_numbers = #tpu.dot_dimension_numbers<[1], [0], [0], [1], [0, 0, 1, 1], [], []>} : vector<8x8xbf16>, vector<8x8xbf16>, vector<8x8xf32> -> vector<8x8xf32>
    %64 = vector.extract_strided_slice %12 {offsets = [0, 1], sizes = [8, 1], strides = [1, 1]} : vector<8x4xf32> to vector<8x1xf32>
    %65 = vector.broadcast %64 : vector<8x1xf32> to vector<8x8xf32>
    %66 = arith.mulf %63, %65 : vector<8x8xf32>
    %c0_23 = arith.constant 0 : index
    %c8 = arith.constant 8 : index
    %67 = vector.load %arg16[%c0_23, %c8] : memref<8x32xf32, #tpu.memory_space<vmem>>, vector<8x8xf32>
    tpu.vector_store %arg16[%c0_23, %c8], %66 {strides = array<i32>} : memref<8x32xf32, #tpu.memory_space<vmem>>, vector<8x8xf32>,
    %68 = vector.extract_strided_slice %8 {offsets = [0, 16], sizes = [8, 8], strides = [1, 1]} : vector<8x32xf32> to vector<8x8xf32>
    %69 = arith.truncf %68 : vector<8x8xf32> to vector<8x8xbf16>
    %70 = vector.extract_strided_slice %9 {offsets = [0, 16], sizes = [8, 8], strides = [1, 1]} : vector<8x32xf32> to vector<8x8xf32>
    %71 = arith.truncf %70 : vector<8x8xf32> to vector<8x8xbf16>
    %72 = vector.extract_strided_slice %10 {offsets = [0, 16], sizes = [8, 8], strides = [1, 1]} : vector<8x32xf32> to vector<8x8xf32>
    %73 = arith.truncf %72 : vector<8x8xf32> to vector<8x8xbf16>
    %cst_24 = arith.constant dense<0.000000e+00> : vector<8x8xf32>
    %74 = tpu.matmul %69, %71, %cst_24 {dimension_numbers = #tpu.dot_dimension_numbers<[1], [1], [0], [0], [0, 0, 1, 0], [], []>} : vector<8x8xbf16>, vector<8x8xbf16>, vector<8x8xf32> -> vector<8x8xf32>
    %cst_25 = arith.constant 0.353553385 : f32
    %75 = vector.broadcast %cst_25 : f32 to vector<8x8xf32>
    %76 = arith.mulf %74, %75 : vector<8x8xf32>
    %cst_26 = arith.constant -1.000000e+30 : f32
    %77 = vector.broadcast %cst_26 : f32 to vector<8x8xf32>
    %78 = arith.select %15, %76, %77 : vector<8x8xi1>, vector<8x8xf32>
    %cst_27 = arith.constant dense<0xFF800000> : vector<8xf32>
    %79 = vector.multi_reduction <maximumf>, %78, %cst_27 [1] : vector<8x8xf32> to vector<8xf32>
    %80 = vector.shape_cast %79 : vector<8xf32> to vector<8x1xf32>
    %81 = vector.broadcast %80 : vector<8x1xf32> to vector<8x8xf32>
    %82 = arith.subf %78, %81 : vector<8x8xf32>
    %83 = math.exp %82 : vector<8x8xf32>
    %cst_28 = arith.constant dense<0.000000e+00> : vector<8xf32>
    %84 = vector.multi_reduction <add>, %83, %cst_28 [1] : vector<8x8xf32> to vector<8xf32>
    %85 = vector.shape_cast %84 : vector<8xf32> to vector<8x1xf32>
    %86 = vector.broadcast %85 : vector<8x1xf32> to vector<8x8xf32>
    %87 = arith.divf %83, %86 : vector<8x8xf32>
    %88 = arith.truncf %87 : vector<8x8xf32> to vector<8x8xbf16>
    %cst_29 = arith.constant dense<0.000000e+00> : vector<8x8xf32>
    %89 = tpu.matmul %88, %73, %cst_29 {dimension_numbers = #tpu.dot_dimension_numbers<[1], [0], [0], [1], [0, 0, 1, 1], [], []>} : vector<8x8xbf16>, vector<8x8xbf16>, vector<8x8xf32> -> vector<8x8xf32>
    %90 = vector.extract_strided_slice %12 {offsets = [0, 2], sizes = [8, 1], strides = [1, 1]} : vector<8x4xf32> to vector<8x1xf32>
    %91 = vector.broadcast %90 : vector<8x1xf32> to vector<8x8xf32>
    %92 = arith.mulf %89, %91 : vector<8x8xf32>
    %c0_30 = arith.constant 0 : index
    %c16 = arith.constant 16 : index
    %93 = vector.load %arg16[%c0_30, %c16] : memref<8x32xf32, #tpu.memory_space<vmem>>, vector<8x8xf32>
    tpu.vector_store %arg16[%c0_30, %c16], %92 {strides = array<i32>} : memref<8x32xf32, #tpu.memory_space<vmem>>, vector<8x8xf32>,
    %94 = vector.extract_strided_slice %8 {offsets = [0, 24], sizes = [8, 8], strides = [1, 1]} : vector<8x32xf32> to vector<8x8xf32>
    %95 = arith.truncf %94 : vector<8x8xf32> to vector<8x8xbf16>
    %96 = vector.extract_strided_slice %9 {offsets = [0, 24], sizes = [8, 8], strides = [1, 1]} : vector<8x32xf32> to vector<8x8xf32>
    %97 = arith.truncf %96 : vector<8x8xf32> to vector<8x8xbf16>
    %98 = vector.extract_strided_slice %10 {offsets = [0, 24], sizes = [8, 8], strides = [1, 1]} : vector<8x32xf32> to vector<8x8xf32>
    %99 = arith.truncf %98 : vector<8x8xf32> to vector<8x8xbf16>
    %cst_31 = arith.constant dense<0.000000e+00> : vector<8x8xf32>
    %100 = tpu.matmul %95, %97, %cst_31 {dimension_numbers = #tpu.dot_dimension_numbers<[1], [1], [0], [0], [0, 0, 1, 0], [], []>} : vector<8x8xbf16>, vector<8x8xbf16>, vector<8x8xf32> -> vector<8x8xf32>
    %cst_32 = arith.constant 0.353553385 : f32
    %101 = vector.broadcast %cst_32 : f32 to vector<8x8xf32>
    %102 = arith.mulf %100, %101 : vector<8x8xf32>
    %cst_33 = arith.constant -1.000000e+30 : f32
    %103 = vector.broadcast %cst_33 : f32 to vector<8x8xf32>
    %104 = arith.select %15, %102, %103 : vector<8x8xi1>, vector<8x8xf32>
    %cst_34 = arith.constant dense<0xFF800000> : vector<8xf32>
    %105 = vector.multi_reduction <maximumf>, %104, %cst_34 [1] : vector<8x8xf32> to vector<8xf32>
    %106 = vector.shape_cast %105 : vector<8xf32> to vector<8x1xf32>
    %107 = vector.broadcast %106 : vector<8x1xf32> to vector<8x8xf32>
    %108 = arith.subf %104, %107 : vector<8x8xf32>
    %109 = math.exp %108 : vector<8x8xf32>
    %cst_35 = arith.constant dense<0.000000e+00> : vector<8xf32>
    %110 = vector.multi_reduction <add>, %109, %cst_35 [1] : vector<8x8xf32> to vector<8xf32>
    %111 = vector.shape_cast %110 : vector<8xf32> to vector<8x1xf32>
    %112 = vector.broadcast %111 : vector<8x1xf32> to vector<8x8xf32>
    %113 = arith.divf %109, %112 : vector<8x8xf32>
    %114 = arith.truncf %113 : vector<8x8xf32> to vector<8x8xbf16>
    %cst_36 = arith.constant dense<0.000000e+00> : vector<8x8xf32>
    %115 = tpu.matmul %114, %99, %cst_36 {dimension_numbers = #tpu.dot_dimension_numbers<[1], [0], [0], [1], [0, 0, 1, 1], [], []>} : vector<8x8xbf16>, vector<8x8xbf16>, vector<8x8xf32> -> vector<8x8xf32>
    %116 = vector.extract_strided_slice %12 {offsets = [0, 3], sizes = [8, 1], strides = [1, 1]} : vector<8x4xf32> to vector<8x1xf32>
    %117 = vector.broadcast %116 : vector<8x1xf32> to vector<8x8xf32>
    %118 = arith.mulf %115, %117 : vector<8x8xf32>
    %c0_37 = arith.constant 0 : index
    %c24 = arith.constant 24 : index
    %119 = vector.load %arg16[%c0_37, %c24] : memref<8x32xf32, #tpu.memory_space<vmem>>, vector<8x8xf32>
    tpu.vector_store %arg16[%c0_37, %c24], %118 {strides = array<i32>} : memref<8x32xf32, #tpu.memory_space<vmem>>, vector<8x8xf32>,
    %c0_38 = arith.constant 0 : index
    %c0_39 = arith.constant 0 : index
    %120 = vector.load %arg16[%c0_38, %c0_39] : memref<8x32xf32, #tpu.memory_space<vmem>>, vector<8x32xf32>
    %121 = arith.truncf %120 : vector<8x32xf32> to vector<8x32xbf16>
    %c0_40 = arith.constant 0 : index
    %c0_41 = arith.constant 0 : index
    %122 = vector.load %arg5[%c0_40, %c0_41] : memref<32x32xbf16, #tpu.memory_space<vmem>>, vector<32x32xbf16>
    %cst_42 = arith.constant dense<0.000000e+00> : vector<8x32xf32>
    %123 = tpu.matmul %121, %122, %cst_42 {dimension_numbers = #tpu.dot_dimension_numbers<[1], [0], [0], [1], [0, 0, 1, 1], [], []>} : vector<8x32xbf16>, vector<32x32xbf16>, vector<8x32xf32> -> vector<8x32xf32>
    %c0_43 = arith.constant 0 : index
    %c0_44 = arith.constant 0 : index
    %124 = vector.load %arg6[%c0_43, %c0_44] : memref<1x32xf32, #tpu.memory_space<vmem>>, vector<1x32xf32>
    %125 = vector.broadcast %124 : vector<1x32xf32> to vector<8x32xf32>
    %126 = arith.addf %123, %125 : vector<8x32xf32>
    %127 = arith.addf %1, %126 : vector<8x32xf32>
    %cst_45 = arith.constant dense<0.000000e+00> : vector<8xf32>
    %128 = vector.multi_reduction <add>, %127, %cst_45 [1] : vector<8x32xf32> to vector<8xf32>
    %129 = vector.shape_cast %128 : vector<8xf32> to vector<8x1xf32>
    %cst_46 = arith.constant 3.200000e+01 : f32
    %130 = vector.broadcast %cst_46 : f32 to vector<8x1xf32>
    %131 = arith.divf %129, %130 : vector<8x1xf32>
    %132 = vector.broadcast %131 : vector<8x1xf32> to vector<8x32xf32>
    %133 = arith.subf %127, %132 : vector<8x32xf32>
    %134 = arith.mulf %133, %133 : vector<8x32xf32>
    %cst_47 = arith.constant dense<0.000000e+00> : vector<8xf32>
    %135 = vector.multi_reduction <add>, %134, %cst_47 [1] : vector<8x32xf32> to vector<8xf32>
    %136 = vector.shape_cast %135 : vector<8xf32> to vector<8x1xf32>
    %cst_48 = arith.constant 3.200000e+01 : f32
    %137 = vector.broadcast %cst_48 : f32 to vector<8x1xf32>
    %138 = arith.divf %136, %137 : vector<8x1xf32>
    %139 = vector.broadcast %131 : vector<8x1xf32> to vector<8x32xf32>
    %140 = arith.subf %127, %139 : vector<8x32xf32>
    %cst_49 = arith.constant 9.99999974E-6 : f32
    %141 = vector.broadcast %cst_49 : f32 to vector<8x1xf32>
    %142 = arith.addf %138, %141 : vector<8x1xf32>
    %143 = math.rsqrt %142 : vector<8x1xf32>
    %144 = vector.broadcast %143 : vector<8x1xf32> to vector<8x32xf32>
    %145 = arith.mulf %140, %144 : vector<8x32xf32>
    %c0_50 = arith.constant 0 : index
    %c0_51 = arith.constant 0 : index
    %146 = vector.load %arg7[%c0_50, %c0_51] : memref<1x32xf32, #tpu.memory_space<vmem>>, vector<1x32xf32>
    %147 = vector.broadcast %146 : vector<1x32xf32> to vector<8x32xf32>
    %148 = arith.mulf %145, %147 : vector<8x32xf32>
    %c0_52 = arith.constant 0 : index
    %c0_53 = arith.constant 0 : index
    %149 = vector.load %arg8[%c0_52, %c0_53] : memref<1x32xf32, #tpu.memory_space<vmem>>, vector<1x32xf32>
    %150 = vector.broadcast %149 : vector<1x32xf32> to vector<8x32xf32>
    %151 = arith.addf %148, %150 : vector<8x32xf32>
    %152 = arith.truncf %151 : vector<8x32xf32> to vector<8x32xbf16>
    %c0_54 = arith.constant 0 : index
    %c0_55 = arith.constant 0 : index
    %153 = vector.load %arg9[%c0_54, %c0_55] : memref<32x128xbf16, #tpu.memory_space<vmem>>, vector<32x128xbf16>
    %cst_56 = arith.constant dense<0.000000e+00> : vector<8x128xf32>
    %154 = tpu.matmul %152, %153, %cst_56 {dimension_numbers = #tpu.dot_dimension_numbers<[1], [0], [0], [1], [0, 0, 1, 1], [], []>} : vector<8x32xbf16>, vector<32x128xbf16>, vector<8x128xf32> -> vector<8x128xf32>
    %c0_57 = arith.constant 0 : index
    %c0_58 = arith.constant 0 : index
    %155 = vector.load %arg10[%c0_57, %c0_58] : memref<1x128xf32, #tpu.memory_space<vmem>>, vector<1x128xf32>
    %156 = vector.broadcast %155 : vector<1x128xf32> to vector<8x128xf32>
    %157 = arith.addf %154, %156 : vector<8x128xf32>
    %cst_59 = arith.constant 0.000000e+00 : f32
    %158 = vector.broadcast %cst_59 : f32 to vector<8x128xf32>
    %159 = arith.maximumf %157, %158 : vector<8x128xf32>
    %160 = arith.truncf %159 : vector<8x128xf32> to vector<8x128xbf16>
    %c0_60 = arith.constant 0 : index
    %c0_61 = arith.constant 0 : index
    %161 = vector.load %arg11[%c0_60, %c0_61] : memref<128x32xbf16, #tpu.memory_space<vmem>>, vector<128x32xbf16>
    %cst_62 = arith.constant dense<0.000000e+00> : vector<8x32xf32>
    %162 = tpu.matmul %160, %161, %cst_62 {dimension_numbers = #tpu.dot_dimension_numbers<[1], [0], [0], [1], [0, 0, 1, 1], [], []>} : vector<8x128xbf16>, vector<128x32xbf16>, vector<8x32xf32> -> vector<8x32xf32>
    %c0_63 = arith.constant 0 : index
    %c0_64 = arith.constant 0 : index
    %163 = vector.load %arg12[%c0_63, %c0_64] : memref<1x32xf32, #tpu.memory_space<vmem>>, vector<1x32xf32>
    %164 = vector.broadcast %163 : vector<1x32xf32> to vector<8x32xf32>
    %165 = arith.addf %162, %164 : vector<8x32xf32>
    %166 = arith.addf %151, %165 : vector<8x32xf32>
    %cst_65 = arith.constant dense<0.000000e+00> : vector<8xf32>
    %167 = vector.multi_reduction <add>, %166, %cst_65 [1] : vector<8x32xf32> to vector<8xf32>
    %168 = vector.shape_cast %167 : vector<8xf32> to vector<8x1xf32>
    %cst_66 = arith.constant 3.200000e+01 : f32
    %169 = vector.broadcast %cst_66 : f32 to vector<8x1xf32>
    %170 = arith.divf %168, %169 : vector<8x1xf32>
    %171 = vector.broadcast %170 : vector<8x1xf32> to vector<8x32xf32>
    %172 = arith.subf %166, %171 : vector<8x32xf32>
    %173 = arith.mulf %172, %172 : vector<8x32xf32>
    %cst_67 = arith.constant dense<0.000000e+00> : vector<8xf32>
    %174 = vector.multi_reduction <add>, %173, %cst_67 [1] : vector<8x32xf32> to vector<8xf32>
    %175 = vector.shape_cast %174 : vector<8xf32> to vector<8x1xf32>
    %cst_68 = arith.constant 3.200000e+01 : f32
    %176 = vector.broadcast %cst_68 : f32 to vector<8x1xf32>
    %177 = arith.divf %175, %176 : vector<8x1xf32>
    %178 = vector.broadcast %170 : vector<8x1xf32> to vector<8x32xf32>
    %179 = arith.subf %166, %178 : vector<8x32xf32>
    %cst_69 = arith.constant 9.99999974E-6 : f32
    %180 = vector.broadcast %cst_69 : f32 to vector<8x1xf32>
    %181 = arith.addf %177, %180 : vector<8x1xf32>
    %182 = math.rsqrt %181 : vector<8x1xf32>
    %183 = vector.broadcast %182 : vector<8x1xf32> to vector<8x32xf32>
    %184 = arith.mulf %179, %183 : vector<8x32xf32>
    %c0_70 = arith.constant 0 : index
    %c0_71 = arith.constant 0 : index
    %185 = vector.load %arg13[%c0_70, %c0_71] : memref<1x32xf32, #tpu.memory_space<vmem>>, vector<1x32xf32>
    %186 = vector.broadcast %185 : vector<1x32xf32> to vector<8x32xf32>
    %187 = arith.mulf %184, %186 : vector<8x32xf32>
    %c0_72 = arith.constant 0 : index
    %c0_73 = arith.constant 0 : index
    %188 = vector.load %arg14[%c0_72, %c0_73] : memref<1x32xf32, #tpu.memory_space<vmem>>, vector<1x32xf32>
    %189 = vector.broadcast %188 : vector<1x32xf32> to vector<8x32xf32>
    %190 = arith.addf %187, %189 : vector<8x32xf32>
    %c0_74 = arith.constant 0 : index
    %c0_75 = arith.constant 0 : index
    %c0_76 = arith.constant 0 : index
    %191 = vector.load %arg15[%c0_74, %c0_75, %c0_76] : memref<1x8x32xf32, #tpu.memory_space<vmem>>, vector<1x8x32xf32>
    %192 = vector.shape_cast %191 : vector<1x8x32xf32> to vector<8x32xf32>
    %193 = vector.shape_cast %190 : vector<8x32xf32> to vector<1x8x32xf32>
    tpu.vector_store %arg15[%c0_74, %c0_75, %c0_76], %193 {strides = array<i32>} : memref<1x8x32xf32, #tpu.memory_space<vmem>>, vector<1x8x32xf32>,
    return
  }
  func.func @transform_0(%arg0: i32) -> (i32, i32, i32) {
    %c0_i32 = arith.constant 0 : i32
    %c0_i32_0 = arith.constant 0 : i32
    %c0_i32_1 = arith.constant 0 : i32
    return %arg0, %c0_i32, %c0_i32_0 : i32, i32, i32
  }
  func.func @transform_1(%arg0: i32) -> (i32, i32, i32) {
    %c0_i32 = arith.constant 0 : i32
    %c0_i32_0 = arith.constant 0 : i32
    %c0_i32_1 = arith.constant 0 : i32
    return %arg0, %c0_i32, %c0_i32_0 : i32, i32, i32
  }
  func.func @transform_2(%arg0: i32) -> (i32, i32) {
    %c0_i32 = arith.constant 0 : i32
    %c0_i32_0 = arith.constant 0 : i32
    %c0_i32_1 = arith.constant 0 : i32
    return %c0_i32, %c0_i32_0 : i32, i32
  }
  func.func @transform_3(%arg0: i32) -> (i32, i32) {
    %c0_i32 = arith.constant 0 : i32
    %c0_i32_0 = arith.constant 0 : i32
    %c0_i32_1 = arith.constant 0 : i32
    return %c0_i32, %c0_i32_0 : i32, i32
  }
  func.func @transform_4(%arg0: i32) -> (i32, i32) {
    %c0_i32 = arith.constant 0 : i32
    %c0_i32_0 = arith.constant 0 : i32
    %c0_i32_1 = arith.constant 0 : i32
    return %c0_i32, %c0_i32_0 : i32, i32
  }
  func.func @transform_5(%arg0: i32) -> (i32, i32) {
    %c0_i32 = arith.constant 0 : i32
    %c0_i32_0 = arith.constant 0 : i32
    %c0_i32_1 = arith.constant 0 : i32
    return %c0_i32, %c0_i32_0 : i32, i32
  }
  func.func @transform_6(%arg0: i32) -> (i32, i32) {
    %c0_i32 = arith.constant 0 : i32
    %c0_i32_0 = arith.constant 0 : i32
    %c0_i32_1 = arith.constant 0 : i32
    return %c0_i32, %c0_i32_0 : i32, i32
  }
  func.func @transform_7(%arg0: i32) -> (i32, i32) {
    %c0_i32 = arith.constant 0 : i32
    %c0_i32_0 = arith.constant 0 : i32
    %c0_i32_1 = arith.constant 0 : i32
    return %c0_i32, %c0_i32_0 : i32, i32
  }
  func.func @transform_8(%arg0: i32) -> (i32, i32) {
    %c0_i32 = arith.constant 0 : i32
    %c0_i32_0 = arith.constant 0 : i32
    %c0_i32_1 = arith.constant 0 : i32
    return %c0_i32, %c0_i32_0 : i32, i32
  }
  func.func @transform_9(%arg0: i32) -> (i32, i32) {
    %c0_i32 = arith.constant 0 : i32
    %c0_i32_0 = arith.constant 0 : i32
    %c0_i32_1 = arith.constant 0 : i32
    return %c0_i32, %c0_i32_0 : i32, i32
  }
  func.func @transform_10(%arg0: i32) -> (i32, i32) {
    %c0_i32 = arith.constant 0 : i32
    %c0_i32_0 = arith.constant 0 : i32
    %c0_i32_1 = arith.constant 0 : i32
    return %c0_i32, %c0_i32_0 : i32, i32
  }
  func.func @transform_11(%arg0: i32) -> (i32, i32) {
    %c0_i32 = arith.constant 0 : i32
    %c0_i32_0 = arith.constant 0 : i32
    %c0_i32_1 = arith.constant 0 : i32
    return %c0_i32, %c0_i32_0 : i32, i32
  }
  func.func @transform_12(%arg0: i32) -> (i32, i32) {
    %c0_i32 = arith.constant 0 : i32
    %c0_i32_0 = arith.constant 0 : i32
    %c0_i32_1 = arith.constant 0 : i32
    return %c0_i32, %c0_i32_0 : i32, i32
  }
  func.func @transform_13(%arg0: i32) -> (i32, i32) {
    %c0_i32 = arith.constant 0 : i32
    %c0_i32_0 = arith.constant 0 : i32
    %c0_i32_1 = arith.constant 0 : i32
    return %c0_i32, %c0_i32_0 : i32, i32
  }
  func.func @transform_14(%arg0: i32) -> (i32, i32, i32) {
    %c0_i32 = arith.constant 0 : i32
    %c0_i32_0 = arith.constant 0 : i32
    %c0_i32_1 = arith.constant 0 : i32
    return %arg0, %c0_i32, %c0_i32_0 : i32, i32, i32
  }
}

module attributes {stable_mosaic.version = 11 : i64} {
  func.func @lstm_kernel(%arg0: i32, %arg1: i32, %arg2: memref<1x8x12xbf16, #tpu.memory_space<vmem>>, %arg3: memref<1x8x1xf32, #tpu.memory_space<vmem>>, %arg4: memref<12x128xbf16, #tpu.memory_space<vmem>>, %arg5: memref<1x128xf32, #tpu.memory_space<vmem>>, %arg6: memref<32x128xf32, #tpu.memory_space<vmem>>, %arg7: memref<1x8x32xf32, #tpu.memory_space<vmem>>, %arg8: memref<1x8x128xf32, #tpu.memory_space<vmem>>, %arg9: memref<1x32xf32, #tpu.memory_space<vmem>>, %arg10: memref<1x32xf32, #tpu.memory_space<vmem>>) attributes {dimension_semantics = [#tpu.dimension_semantics<parallel>, #tpu.dimension_semantics<arbitrary>], iteration_bounds = array<i64: 2, 1>, scalar_prefetch = 0 : i64, scratch_operands = 3 : i64, tpu.core_type = #tpu.core_type<tc>, window_params = [{transform_indices = @transform_0, window_bounds = array<i64: 1, 8, 12>}, {transform_indices = @transform_1, window_bounds = array<i64: 1, 8, 1>}, {pipeline_mode = #tpu.pipeline_mode<synchronous>, transform_indices = @transform_2, window_bounds = array<i64: 12, 128>}, {pipeline_mode = #tpu.pipeline_mode<synchronous>, transform_indices = @transform_3, window_bounds = array<i64: 1, 128>}, {pipeline_mode = #tpu.pipeline_mode<synchronous>, transform_indices = @transform_4, window_bounds = array<i64: 32, 128>}, {transform_indices = @transform_5, window_bounds = array<i64: 1, 8, 32>}]} {
    %c0_i32 = arith.constant 0 : i32
    %0 = arith.cmpi eq, %arg1, %c0_i32 : i32
    %1 = arith.extui %0 : i1 to i32
    %c0_i32_0 = arith.constant 0 : i32
    %2 = arith.cmpi ne, %1, %c0_i32_0 : i32
    scf.if %2 {
      %cst_155 = arith.constant 0.000000e+00 : f32
      %285 = vector.broadcast %cst_155 : f32 to vector<1x32xf32>
      %c0_156 = arith.constant 0 : index
      %c0_157 = arith.constant 0 : index
      %286 = vector.load %arg9[%c0_156, %c0_157] : memref<1x32xf32, #tpu.memory_space<vmem>>, vector<1x32xf32>
      tpu.vector_store %arg9[%c0_156, %c0_157], %285 {strides = array<i32>} : memref<1x32xf32, #tpu.memory_space<vmem>>, vector<1x32xf32>,
      %cst_158 = arith.constant 0.000000e+00 : f32
      %287 = vector.broadcast %cst_158 : f32 to vector<1x32xf32>
      %c0_159 = arith.constant 0 : index
      %c0_160 = arith.constant 0 : index
      %288 = vector.load %arg10[%c0_159, %c0_160] : memref<1x32xf32, #tpu.memory_space<vmem>>, vector<1x32xf32>
      tpu.vector_store %arg10[%c0_159, %c0_160], %287 {strides = array<i32>} : memref<1x32xf32, #tpu.memory_space<vmem>>, vector<1x32xf32>,
    } else {
    }
    %c0 = arith.constant 0 : index
    %c0_1 = arith.constant 0 : index
    %c0_2 = arith.constant 0 : index
    %3 = vector.load %arg2[%c0, %c0_1, %c0_2] : memref<1x8x12xbf16, #tpu.memory_space<vmem>>, vector<1x8x12xbf16>
    %4 = vector.shape_cast %3 : vector<1x8x12xbf16> to vector<8x12xbf16>
    %c0_3 = arith.constant 0 : index
    %c0_4 = arith.constant 0 : index
    %5 = vector.load %arg4[%c0_3, %c0_4] : memref<12x128xbf16, #tpu.memory_space<vmem>>, vector<12x128xbf16>
    %cst = arith.constant dense<0.000000e+00> : vector<8x128xf32>
    %6 = tpu.matmul %4, %5, %cst {dimension_numbers = #tpu.dot_dimension_numbers<[1], [0], [0], [1], [0, 0, 1, 1], [], []>} : vector<8x12xbf16>, vector<12x128xbf16>, vector<8x128xf32> -> vector<8x128xf32>
    %c0_5 = arith.constant 0 : index
    %c0_6 = arith.constant 0 : index
    %7 = vector.load %arg5[%c0_5, %c0_6] : memref<1x128xf32, #tpu.memory_space<vmem>>, vector<1x128xf32>
    %8 = vector.broadcast %7 : vector<1x128xf32> to vector<8x128xf32>
    %9 = arith.addf %6, %8 : vector<8x128xf32>
    %c0_7 = arith.constant 0 : index
    %c0_8 = arith.constant 0 : index
    %c0_9 = arith.constant 0 : index
    %10 = vector.load %arg8[%c0_7, %c0_8, %c0_9] : memref<1x8x128xf32, #tpu.memory_space<vmem>>, vector<1x8x128xf32>
    %11 = vector.shape_cast %10 : vector<1x8x128xf32> to vector<8x128xf32>
    %12 = vector.shape_cast %9 : vector<8x128xf32> to vector<1x8x128xf32>
    tpu.vector_store %arg8[%c0_7, %c0_8, %c0_9], %12 {strides = array<i32>} : memref<1x8x128xf32, #tpu.memory_space<vmem>>, vector<1x8x128xf32>,
    %c0_i32_10 = arith.constant 0 : i32
    %c0_11 = arith.constant 0 : index
    %13 = arith.index_cast %c0_i32_10 : i32 to index
    %c0_12 = arith.constant 0 : index
    %14 = vector.load %arg8[%c0_11, %13, %c0_12] : memref<1x8x128xf32, #tpu.memory_space<vmem>>, vector<1x1x128xf32>
    %15 = vector.shape_cast %14 : vector<1x1x128xf32> to vector<1x128xf32>
    %c0_13 = arith.constant 0 : index
    %c0_14 = arith.constant 0 : index
    %16 = vector.load %arg9[%c0_13, %c0_14] : memref<1x32xf32, #tpu.memory_space<vmem>>, vector<1x32xf32>
    %c0_15 = arith.constant 0 : index
    %c0_16 = arith.constant 0 : index
    %17 = vector.load %arg6[%c0_15, %c0_16] : memref<32x128xf32, #tpu.memory_space<vmem>>, vector<32x128xf32>
    %cst_17 = arith.constant dense<0.000000e+00> : vector<1x128xf32>
    %18 = tpu.matmul %16, %17, %cst_17 {dimension_numbers = #tpu.dot_dimension_numbers<[1], [0], [0], [1], [0, 0, 1, 1], [], []>} : vector<1x32xf32>, vector<32x128xf32>, vector<1x128xf32> -> vector<1x128xf32>
    %19 = arith.addf %15, %18 : vector<1x128xf32>
    %20 = vector.extract_strided_slice %19 {offsets = [0, 0], sizes = [1, 96], strides = [1, 1]} : vector<1x128xf32> to vector<1x96xf32>
    %21 = arith.negf %20 : vector<1x96xf32>
    %22 = math.exp %21 : vector<1x96xf32>
    %cst_18 = arith.constant 1.000000e+00 : f32
    %23 = vector.broadcast %cst_18 : f32 to vector<1x96xf32>
    %24 = arith.addf %23, %22 : vector<1x96xf32>
    %25 = arith.divf %23, %24 : vector<1x96xf32>
    %26 = vector.extract_strided_slice %25 {offsets = [0, 0], sizes = [1, 32], strides = [1, 1]} : vector<1x96xf32> to vector<1x32xf32>
    %27 = vector.extract_strided_slice %25 {offsets = [0, 32], sizes = [1, 32], strides = [1, 1]} : vector<1x96xf32> to vector<1x32xf32>
    %28 = vector.extract_strided_slice %25 {offsets = [0, 64], sizes = [1, 32], strides = [1, 1]} : vector<1x96xf32> to vector<1x32xf32>
    %29 = vector.extract_strided_slice %19 {offsets = [0, 96], sizes = [1, 32], strides = [1, 1]} : vector<1x128xf32> to vector<1x32xf32>
    %30 = math.tanh %29 : vector<1x32xf32>
    %c0_19 = arith.constant 0 : index
    %c0_20 = arith.constant 0 : index
    %31 = vector.load %arg10[%c0_19, %c0_20] : memref<1x32xf32, #tpu.memory_space<vmem>>, vector<1x32xf32>
    %32 = arith.mulf %27, %31 : vector<1x32xf32>
    %33 = arith.mulf %26, %30 : vector<1x32xf32>
    %34 = arith.addf %32, %33 : vector<1x32xf32>
    %35 = math.tanh %34 : vector<1x32xf32>
    %36 = arith.mulf %28, %35 : vector<1x32xf32>
    %c0_21 = arith.constant 0 : index
    %c0_22 = arith.constant 0 : index
    %37 = vector.load %arg10[%c0_21, %c0_22] : memref<1x32xf32, #tpu.memory_space<vmem>>, vector<1x32xf32>
    tpu.vector_store %arg10[%c0_21, %c0_22], %34 {strides = array<i32>} : memref<1x32xf32, #tpu.memory_space<vmem>>, vector<1x32xf32>,
    %c0_23 = arith.constant 0 : index
    %c0_24 = arith.constant 0 : index
    %38 = vector.load %arg9[%c0_23, %c0_24] : memref<1x32xf32, #tpu.memory_space<vmem>>, vector<1x32xf32>
    tpu.vector_store %arg9[%c0_23, %c0_24], %36 {strides = array<i32>} : memref<1x32xf32, #tpu.memory_space<vmem>>, vector<1x32xf32>,
    %c0_25 = arith.constant 0 : index
    %39 = arith.index_cast %c0_i32_10 : i32 to index
    %c0_26 = arith.constant 0 : index
    %40 = vector.load %arg3[%c0_25, %39, %c0_26] : memref<1x8x1xf32, #tpu.memory_space<vmem>>, vector<1x1x1xf32>
    %41 = vector.shape_cast %40 : vector<1x1x1xf32> to vector<1x1xf32>
    %42 = vector.broadcast %41 : vector<1x1xf32> to vector<1x32xf32>
    %43 = arith.mulf %36, %42 : vector<1x32xf32>
    %44 = vector.shape_cast %43 : vector<1x32xf32> to vector<1x1x32xf32>
    %c0_27 = arith.constant 0 : index
    %45 = arith.index_cast %c0_i32_10 : i32 to index
    %c0_28 = arith.constant 0 : index
    %46 = vector.load %arg7[%c0_27, %45, %c0_28] : memref<1x8x32xf32, #tpu.memory_space<vmem>>, vector<1x1x32xf32>
    tpu.vector_store %arg7[%c0_27, %45, %c0_28], %44 {strides = array<i32>} : memref<1x8x32xf32, #tpu.memory_space<vmem>>, vector<1x1x32xf32>,
    %c1_i32 = arith.constant 1 : i32
    %c0_29 = arith.constant 0 : index
    %47 = arith.index_cast %c1_i32 : i32 to index
    %c0_30 = arith.constant 0 : index
    %48 = vector.load %arg8[%c0_29, %47, %c0_30] : memref<1x8x128xf32, #tpu.memory_space<vmem>>, vector<1x1x128xf32>
    %49 = vector.shape_cast %48 : vector<1x1x128xf32> to vector<1x128xf32>
    %c0_31 = arith.constant 0 : index
    %c0_32 = arith.constant 0 : index
    %50 = vector.load %arg9[%c0_31, %c0_32] : memref<1x32xf32, #tpu.memory_space<vmem>>, vector<1x32xf32>
    %c0_33 = arith.constant 0 : index
    %c0_34 = arith.constant 0 : index
    %51 = vector.load %arg6[%c0_33, %c0_34] : memref<32x128xf32, #tpu.memory_space<vmem>>, vector<32x128xf32>
    %cst_35 = arith.constant dense<0.000000e+00> : vector<1x128xf32>
    %52 = tpu.matmul %50, %51, %cst_35 {dimension_numbers = #tpu.dot_dimension_numbers<[1], [0], [0], [1], [0, 0, 1, 1], [], []>} : vector<1x32xf32>, vector<32x128xf32>, vector<1x128xf32> -> vector<1x128xf32>
    %53 = arith.addf %49, %52 : vector<1x128xf32>
    %54 = vector.extract_strided_slice %53 {offsets = [0, 0], sizes = [1, 96], strides = [1, 1]} : vector<1x128xf32> to vector<1x96xf32>
    %55 = arith.negf %54 : vector<1x96xf32>
    %56 = math.exp %55 : vector<1x96xf32>
    %cst_36 = arith.constant 1.000000e+00 : f32
    %57 = vector.broadcast %cst_36 : f32 to vector<1x96xf32>
    %58 = arith.addf %57, %56 : vector<1x96xf32>
    %59 = arith.divf %57, %58 : vector<1x96xf32>
    %60 = vector.extract_strided_slice %59 {offsets = [0, 0], sizes = [1, 32], strides = [1, 1]} : vector<1x96xf32> to vector<1x32xf32>
    %61 = vector.extract_strided_slice %59 {offsets = [0, 32], sizes = [1, 32], strides = [1, 1]} : vector<1x96xf32> to vector<1x32xf32>
    %62 = vector.extract_strided_slice %59 {offsets = [0, 64], sizes = [1, 32], strides = [1, 1]} : vector<1x96xf32> to vector<1x32xf32>
    %63 = vector.extract_strided_slice %53 {offsets = [0, 96], sizes = [1, 32], strides = [1, 1]} : vector<1x128xf32> to vector<1x32xf32>
    %64 = math.tanh %63 : vector<1x32xf32>
    %c0_37 = arith.constant 0 : index
    %c0_38 = arith.constant 0 : index
    %65 = vector.load %arg10[%c0_37, %c0_38] : memref<1x32xf32, #tpu.memory_space<vmem>>, vector<1x32xf32>
    %66 = arith.mulf %61, %65 : vector<1x32xf32>
    %67 = arith.mulf %60, %64 : vector<1x32xf32>
    %68 = arith.addf %66, %67 : vector<1x32xf32>
    %69 = math.tanh %68 : vector<1x32xf32>
    %70 = arith.mulf %62, %69 : vector<1x32xf32>
    %c0_39 = arith.constant 0 : index
    %c0_40 = arith.constant 0 : index
    %71 = vector.load %arg10[%c0_39, %c0_40] : memref<1x32xf32, #tpu.memory_space<vmem>>, vector<1x32xf32>
    tpu.vector_store %arg10[%c0_39, %c0_40], %68 {strides = array<i32>} : memref<1x32xf32, #tpu.memory_space<vmem>>, vector<1x32xf32>,
    %c0_41 = arith.constant 0 : index
    %c0_42 = arith.constant 0 : index
    %72 = vector.load %arg9[%c0_41, %c0_42] : memref<1x32xf32, #tpu.memory_space<vmem>>, vector<1x32xf32>
    tpu.vector_store %arg9[%c0_41, %c0_42], %70 {strides = array<i32>} : memref<1x32xf32, #tpu.memory_space<vmem>>, vector<1x32xf32>,
    %c0_43 = arith.constant 0 : index
    %73 = arith.index_cast %c1_i32 : i32 to index
    %c0_44 = arith.constant 0 : index
    %74 = vector.load %arg3[%c0_43, %73, %c0_44] : memref<1x8x1xf32, #tpu.memory_space<vmem>>, vector<1x1x1xf32>
    %75 = vector.shape_cast %74 : vector<1x1x1xf32> to vector<1x1xf32>
    %76 = vector.broadcast %75 : vector<1x1xf32> to vector<1x32xf32>
    %77 = arith.mulf %70, %76 : vector<1x32xf32>
    %78 = vector.shape_cast %77 : vector<1x32xf32> to vector<1x1x32xf32>
    %c0_45 = arith.constant 0 : index
    %79 = arith.index_cast %c1_i32 : i32 to index
    %c0_46 = arith.constant 0 : index
    %80 = vector.load %arg7[%c0_45, %79, %c0_46] : memref<1x8x32xf32, #tpu.memory_space<vmem>>, vector<1x1x32xf32>
    tpu.vector_store %arg7[%c0_45, %79, %c0_46], %78 {strides = array<i32>} : memref<1x8x32xf32, #tpu.memory_space<vmem>>, vector<1x1x32xf32>,
    %c2_i32 = arith.constant 2 : i32
    %c0_47 = arith.constant 0 : index
    %81 = arith.index_cast %c2_i32 : i32 to index
    %c0_48 = arith.constant 0 : index
    %82 = vector.load %arg8[%c0_47, %81, %c0_48] : memref<1x8x128xf32, #tpu.memory_space<vmem>>, vector<1x1x128xf32>
    %83 = vector.shape_cast %82 : vector<1x1x128xf32> to vector<1x128xf32>
    %c0_49 = arith.constant 0 : index
    %c0_50 = arith.constant 0 : index
    %84 = vector.load %arg9[%c0_49, %c0_50] : memref<1x32xf32, #tpu.memory_space<vmem>>, vector<1x32xf32>
    %c0_51 = arith.constant 0 : index
    %c0_52 = arith.constant 0 : index
    %85 = vector.load %arg6[%c0_51, %c0_52] : memref<32x128xf32, #tpu.memory_space<vmem>>, vector<32x128xf32>
    %cst_53 = arith.constant dense<0.000000e+00> : vector<1x128xf32>
    %86 = tpu.matmul %84, %85, %cst_53 {dimension_numbers = #tpu.dot_dimension_numbers<[1], [0], [0], [1], [0, 0, 1, 1], [], []>} : vector<1x32xf32>, vector<32x128xf32>, vector<1x128xf32> -> vector<1x128xf32>
    %87 = arith.addf %83, %86 : vector<1x128xf32>
    %88 = vector.extract_strided_slice %87 {offsets = [0, 0], sizes = [1, 96], strides = [1, 1]} : vector<1x128xf32> to vector<1x96xf32>
    %89 = arith.negf %88 : vector<1x96xf32>
    %90 = math.exp %89 : vector<1x96xf32>
    %cst_54 = arith.constant 1.000000e+00 : f32
    %91 = vector.broadcast %cst_54 : f32 to vector<1x96xf32>
    %92 = arith.addf %91, %90 : vector<1x96xf32>
    %93 = arith.divf %91, %92 : vector<1x96xf32>
    %94 = vector.extract_strided_slice %93 {offsets = [0, 0], sizes = [1, 32], strides = [1, 1]} : vector<1x96xf32> to vector<1x32xf32>
    %95 = vector.extract_strided_slice %93 {offsets = [0, 32], sizes = [1, 32], strides = [1, 1]} : vector<1x96xf32> to vector<1x32xf32>
    %96 = vector.extract_strided_slice %93 {offsets = [0, 64], sizes = [1, 32], strides = [1, 1]} : vector<1x96xf32> to vector<1x32xf32>
    %97 = vector.extract_strided_slice %87 {offsets = [0, 96], sizes = [1, 32], strides = [1, 1]} : vector<1x128xf32> to vector<1x32xf32>
    %98 = math.tanh %97 : vector<1x32xf32>
    %c0_55 = arith.constant 0 : index
    %c0_56 = arith.constant 0 : index
    %99 = vector.load %arg10[%c0_55, %c0_56] : memref<1x32xf32, #tpu.memory_space<vmem>>, vector<1x32xf32>
    %100 = arith.mulf %95, %99 : vector<1x32xf32>
    %101 = arith.mulf %94, %98 : vector<1x32xf32>
    %102 = arith.addf %100, %101 : vector<1x32xf32>
    %103 = math.tanh %102 : vector<1x32xf32>
    %104 = arith.mulf %96, %103 : vector<1x32xf32>
    %c0_57 = arith.constant 0 : index
    %c0_58 = arith.constant 0 : index
    %105 = vector.load %arg10[%c0_57, %c0_58] : memref<1x32xf32, #tpu.memory_space<vmem>>, vector<1x32xf32>
    tpu.vector_store %arg10[%c0_57, %c0_58], %102 {strides = array<i32>} : memref<1x32xf32, #tpu.memory_space<vmem>>, vector<1x32xf32>,
    %c0_59 = arith.constant 0 : index
    %c0_60 = arith.constant 0 : index
    %106 = vector.load %arg9[%c0_59, %c0_60] : memref<1x32xf32, #tpu.memory_space<vmem>>, vector<1x32xf32>
    tpu.vector_store %arg9[%c0_59, %c0_60], %104 {strides = array<i32>} : memref<1x32xf32, #tpu.memory_space<vmem>>, vector<1x32xf32>,
    %c0_61 = arith.constant 0 : index
    %107 = arith.index_cast %c2_i32 : i32 to index
    %c0_62 = arith.constant 0 : index
    %108 = vector.load %arg3[%c0_61, %107, %c0_62] : memref<1x8x1xf32, #tpu.memory_space<vmem>>, vector<1x1x1xf32>
    %109 = vector.shape_cast %108 : vector<1x1x1xf32> to vector<1x1xf32>
    %110 = vector.broadcast %109 : vector<1x1xf32> to vector<1x32xf32>
    %111 = arith.mulf %104, %110 : vector<1x32xf32>
    %112 = vector.shape_cast %111 : vector<1x32xf32> to vector<1x1x32xf32>
    %c0_63 = arith.constant 0 : index
    %113 = arith.index_cast %c2_i32 : i32 to index
    %c0_64 = arith.constant 0 : index
    %114 = vector.load %arg7[%c0_63, %113, %c0_64] : memref<1x8x32xf32, #tpu.memory_space<vmem>>, vector<1x1x32xf32>
    tpu.vector_store %arg7[%c0_63, %113, %c0_64], %112 {strides = array<i32>} : memref<1x8x32xf32, #tpu.memory_space<vmem>>, vector<1x1x32xf32>,
    %c3_i32 = arith.constant 3 : i32
    %c0_65 = arith.constant 0 : index
    %115 = arith.index_cast %c3_i32 : i32 to index
    %c0_66 = arith.constant 0 : index
    %116 = vector.load %arg8[%c0_65, %115, %c0_66] : memref<1x8x128xf32, #tpu.memory_space<vmem>>, vector<1x1x128xf32>
    %117 = vector.shape_cast %116 : vector<1x1x128xf32> to vector<1x128xf32>
    %c0_67 = arith.constant 0 : index
    %c0_68 = arith.constant 0 : index
    %118 = vector.load %arg9[%c0_67, %c0_68] : memref<1x32xf32, #tpu.memory_space<vmem>>, vector<1x32xf32>
    %c0_69 = arith.constant 0 : index
    %c0_70 = arith.constant 0 : index
    %119 = vector.load %arg6[%c0_69, %c0_70] : memref<32x128xf32, #tpu.memory_space<vmem>>, vector<32x128xf32>
    %cst_71 = arith.constant dense<0.000000e+00> : vector<1x128xf32>
    %120 = tpu.matmul %118, %119, %cst_71 {dimension_numbers = #tpu.dot_dimension_numbers<[1], [0], [0], [1], [0, 0, 1, 1], [], []>} : vector<1x32xf32>, vector<32x128xf32>, vector<1x128xf32> -> vector<1x128xf32>
    %121 = arith.addf %117, %120 : vector<1x128xf32>
    %122 = vector.extract_strided_slice %121 {offsets = [0, 0], sizes = [1, 96], strides = [1, 1]} : vector<1x128xf32> to vector<1x96xf32>
    %123 = arith.negf %122 : vector<1x96xf32>
    %124 = math.exp %123 : vector<1x96xf32>
    %cst_72 = arith.constant 1.000000e+00 : f32
    %125 = vector.broadcast %cst_72 : f32 to vector<1x96xf32>
    %126 = arith.addf %125, %124 : vector<1x96xf32>
    %127 = arith.divf %125, %126 : vector<1x96xf32>
    %128 = vector.extract_strided_slice %127 {offsets = [0, 0], sizes = [1, 32], strides = [1, 1]} : vector<1x96xf32> to vector<1x32xf32>
    %129 = vector.extract_strided_slice %127 {offsets = [0, 32], sizes = [1, 32], strides = [1, 1]} : vector<1x96xf32> to vector<1x32xf32>
    %130 = vector.extract_strided_slice %127 {offsets = [0, 64], sizes = [1, 32], strides = [1, 1]} : vector<1x96xf32> to vector<1x32xf32>
    %131 = vector.extract_strided_slice %121 {offsets = [0, 96], sizes = [1, 32], strides = [1, 1]} : vector<1x128xf32> to vector<1x32xf32>
    %132 = math.tanh %131 : vector<1x32xf32>
    %c0_73 = arith.constant 0 : index
    %c0_74 = arith.constant 0 : index
    %133 = vector.load %arg10[%c0_73, %c0_74] : memref<1x32xf32, #tpu.memory_space<vmem>>, vector<1x32xf32>
    %134 = arith.mulf %129, %133 : vector<1x32xf32>
    %135 = arith.mulf %128, %132 : vector<1x32xf32>
    %136 = arith.addf %134, %135 : vector<1x32xf32>
    %137 = math.tanh %136 : vector<1x32xf32>
    %138 = arith.mulf %130, %137 : vector<1x32xf32>
    %c0_75 = arith.constant 0 : index
    %c0_76 = arith.constant 0 : index
    %139 = vector.load %arg10[%c0_75, %c0_76] : memref<1x32xf32, #tpu.memory_space<vmem>>, vector<1x32xf32>
    tpu.vector_store %arg10[%c0_75, %c0_76], %136 {strides = array<i32>} : memref<1x32xf32, #tpu.memory_space<vmem>>, vector<1x32xf32>,
    %c0_77 = arith.constant 0 : index
    %c0_78 = arith.constant 0 : index
    %140 = vector.load %arg9[%c0_77, %c0_78] : memref<1x32xf32, #tpu.memory_space<vmem>>, vector<1x32xf32>
    tpu.vector_store %arg9[%c0_77, %c0_78], %138 {strides = array<i32>} : memref<1x32xf32, #tpu.memory_space<vmem>>, vector<1x32xf32>,
    %c0_79 = arith.constant 0 : index
    %141 = arith.index_cast %c3_i32 : i32 to index
    %c0_80 = arith.constant 0 : index
    %142 = vector.load %arg3[%c0_79, %141, %c0_80] : memref<1x8x1xf32, #tpu.memory_space<vmem>>, vector<1x1x1xf32>
    %143 = vector.shape_cast %142 : vector<1x1x1xf32> to vector<1x1xf32>
    %144 = vector.broadcast %143 : vector<1x1xf32> to vector<1x32xf32>
    %145 = arith.mulf %138, %144 : vector<1x32xf32>
    %146 = vector.shape_cast %145 : vector<1x32xf32> to vector<1x1x32xf32>
    %c0_81 = arith.constant 0 : index
    %147 = arith.index_cast %c3_i32 : i32 to index
    %c0_82 = arith.constant 0 : index
    %148 = vector.load %arg7[%c0_81, %147, %c0_82] : memref<1x8x32xf32, #tpu.memory_space<vmem>>, vector<1x1x32xf32>
    tpu.vector_store %arg7[%c0_81, %147, %c0_82], %146 {strides = array<i32>} : memref<1x8x32xf32, #tpu.memory_space<vmem>>, vector<1x1x32xf32>,
    %c4_i32 = arith.constant 4 : i32
    %c0_83 = arith.constant 0 : index
    %149 = arith.index_cast %c4_i32 : i32 to index
    %c0_84 = arith.constant 0 : index
    %150 = vector.load %arg8[%c0_83, %149, %c0_84] : memref<1x8x128xf32, #tpu.memory_space<vmem>>, vector<1x1x128xf32>
    %151 = vector.shape_cast %150 : vector<1x1x128xf32> to vector<1x128xf32>
    %c0_85 = arith.constant 0 : index
    %c0_86 = arith.constant 0 : index
    %152 = vector.load %arg9[%c0_85, %c0_86] : memref<1x32xf32, #tpu.memory_space<vmem>>, vector<1x32xf32>
    %c0_87 = arith.constant 0 : index
    %c0_88 = arith.constant 0 : index
    %153 = vector.load %arg6[%c0_87, %c0_88] : memref<32x128xf32, #tpu.memory_space<vmem>>, vector<32x128xf32>
    %cst_89 = arith.constant dense<0.000000e+00> : vector<1x128xf32>
    %154 = tpu.matmul %152, %153, %cst_89 {dimension_numbers = #tpu.dot_dimension_numbers<[1], [0], [0], [1], [0, 0, 1, 1], [], []>} : vector<1x32xf32>, vector<32x128xf32>, vector<1x128xf32> -> vector<1x128xf32>
    %155 = arith.addf %151, %154 : vector<1x128xf32>
    %156 = vector.extract_strided_slice %155 {offsets = [0, 0], sizes = [1, 96], strides = [1, 1]} : vector<1x128xf32> to vector<1x96xf32>
    %157 = arith.negf %156 : vector<1x96xf32>
    %158 = math.exp %157 : vector<1x96xf32>
    %cst_90 = arith.constant 1.000000e+00 : f32
    %159 = vector.broadcast %cst_90 : f32 to vector<1x96xf32>
    %160 = arith.addf %159, %158 : vector<1x96xf32>
    %161 = arith.divf %159, %160 : vector<1x96xf32>
    %162 = vector.extract_strided_slice %161 {offsets = [0, 0], sizes = [1, 32], strides = [1, 1]} : vector<1x96xf32> to vector<1x32xf32>
    %163 = vector.extract_strided_slice %161 {offsets = [0, 32], sizes = [1, 32], strides = [1, 1]} : vector<1x96xf32> to vector<1x32xf32>
    %164 = vector.extract_strided_slice %161 {offsets = [0, 64], sizes = [1, 32], strides = [1, 1]} : vector<1x96xf32> to vector<1x32xf32>
    %165 = vector.extract_strided_slice %155 {offsets = [0, 96], sizes = [1, 32], strides = [1, 1]} : vector<1x128xf32> to vector<1x32xf32>
    %166 = math.tanh %165 : vector<1x32xf32>
    %c0_91 = arith.constant 0 : index
    %c0_92 = arith.constant 0 : index
    %167 = vector.load %arg10[%c0_91, %c0_92] : memref<1x32xf32, #tpu.memory_space<vmem>>, vector<1x32xf32>
    %168 = arith.mulf %163, %167 : vector<1x32xf32>
    %169 = arith.mulf %162, %166 : vector<1x32xf32>
    %170 = arith.addf %168, %169 : vector<1x32xf32>
    %171 = math.tanh %170 : vector<1x32xf32>
    %172 = arith.mulf %164, %171 : vector<1x32xf32>
    %c0_93 = arith.constant 0 : index
    %c0_94 = arith.constant 0 : index
    %173 = vector.load %arg10[%c0_93, %c0_94] : memref<1x32xf32, #tpu.memory_space<vmem>>, vector<1x32xf32>
    tpu.vector_store %arg10[%c0_93, %c0_94], %170 {strides = array<i32>} : memref<1x32xf32, #tpu.memory_space<vmem>>, vector<1x32xf32>,
    %c0_95 = arith.constant 0 : index
    %c0_96 = arith.constant 0 : index
    %174 = vector.load %arg9[%c0_95, %c0_96] : memref<1x32xf32, #tpu.memory_space<vmem>>, vector<1x32xf32>
    tpu.vector_store %arg9[%c0_95, %c0_96], %172 {strides = array<i32>} : memref<1x32xf32, #tpu.memory_space<vmem>>, vector<1x32xf32>,
    %c0_97 = arith.constant 0 : index
    %175 = arith.index_cast %c4_i32 : i32 to index
    %c0_98 = arith.constant 0 : index
    %176 = vector.load %arg3[%c0_97, %175, %c0_98] : memref<1x8x1xf32, #tpu.memory_space<vmem>>, vector<1x1x1xf32>
    %177 = vector.shape_cast %176 : vector<1x1x1xf32> to vector<1x1xf32>
    %178 = vector.broadcast %177 : vector<1x1xf32> to vector<1x32xf32>
    %179 = arith.mulf %172, %178 : vector<1x32xf32>
    %180 = vector.shape_cast %179 : vector<1x32xf32> to vector<1x1x32xf32>
    %c0_99 = arith.constant 0 : index
    %181 = arith.index_cast %c4_i32 : i32 to index
    %c0_100 = arith.constant 0 : index
    %182 = vector.load %arg7[%c0_99, %181, %c0_100] : memref<1x8x32xf32, #tpu.memory_space<vmem>>, vector<1x1x32xf32>
    tpu.vector_store %arg7[%c0_99, %181, %c0_100], %180 {strides = array<i32>} : memref<1x8x32xf32, #tpu.memory_space<vmem>>, vector<1x1x32xf32>,
    %c5_i32 = arith.constant 5 : i32
    %c0_101 = arith.constant 0 : index
    %183 = arith.index_cast %c5_i32 : i32 to index
    %c0_102 = arith.constant 0 : index
    %184 = vector.load %arg8[%c0_101, %183, %c0_102] : memref<1x8x128xf32, #tpu.memory_space<vmem>>, vector<1x1x128xf32>
    %185 = vector.shape_cast %184 : vector<1x1x128xf32> to vector<1x128xf32>
    %c0_103 = arith.constant 0 : index
    %c0_104 = arith.constant 0 : index
    %186 = vector.load %arg9[%c0_103, %c0_104] : memref<1x32xf32, #tpu.memory_space<vmem>>, vector<1x32xf32>
    %c0_105 = arith.constant 0 : index
    %c0_106 = arith.constant 0 : index
    %187 = vector.load %arg6[%c0_105, %c0_106] : memref<32x128xf32, #tpu.memory_space<vmem>>, vector<32x128xf32>
    %cst_107 = arith.constant dense<0.000000e+00> : vector<1x128xf32>
    %188 = tpu.matmul %186, %187, %cst_107 {dimension_numbers = #tpu.dot_dimension_numbers<[1], [0], [0], [1], [0, 0, 1, 1], [], []>} : vector<1x32xf32>, vector<32x128xf32>, vector<1x128xf32> -> vector<1x128xf32>
    %189 = arith.addf %185, %188 : vector<1x128xf32>
    %190 = vector.extract_strided_slice %189 {offsets = [0, 0], sizes = [1, 96], strides = [1, 1]} : vector<1x128xf32> to vector<1x96xf32>
    %191 = arith.negf %190 : vector<1x96xf32>
    %192 = math.exp %191 : vector<1x96xf32>
    %cst_108 = arith.constant 1.000000e+00 : f32
    %193 = vector.broadcast %cst_108 : f32 to vector<1x96xf32>
    %194 = arith.addf %193, %192 : vector<1x96xf32>
    %195 = arith.divf %193, %194 : vector<1x96xf32>
    %196 = vector.extract_strided_slice %195 {offsets = [0, 0], sizes = [1, 32], strides = [1, 1]} : vector<1x96xf32> to vector<1x32xf32>
    %197 = vector.extract_strided_slice %195 {offsets = [0, 32], sizes = [1, 32], strides = [1, 1]} : vector<1x96xf32> to vector<1x32xf32>
    %198 = vector.extract_strided_slice %195 {offsets = [0, 64], sizes = [1, 32], strides = [1, 1]} : vector<1x96xf32> to vector<1x32xf32>
    %199 = vector.extract_strided_slice %189 {offsets = [0, 96], sizes = [1, 32], strides = [1, 1]} : vector<1x128xf32> to vector<1x32xf32>
    %200 = math.tanh %199 : vector<1x32xf32>
    %c0_109 = arith.constant 0 : index
    %c0_110 = arith.constant 0 : index
    %201 = vector.load %arg10[%c0_109, %c0_110] : memref<1x32xf32, #tpu.memory_space<vmem>>, vector<1x32xf32>
    %202 = arith.mulf %197, %201 : vector<1x32xf32>
    %203 = arith.mulf %196, %200 : vector<1x32xf32>
    %204 = arith.addf %202, %203 : vector<1x32xf32>
    %205 = math.tanh %204 : vector<1x32xf32>
    %206 = arith.mulf %198, %205 : vector<1x32xf32>
    %c0_111 = arith.constant 0 : index
    %c0_112 = arith.constant 0 : index
    %207 = vector.load %arg10[%c0_111, %c0_112] : memref<1x32xf32, #tpu.memory_space<vmem>>, vector<1x32xf32>
    tpu.vector_store %arg10[%c0_111, %c0_112], %204 {strides = array<i32>} : memref<1x32xf32, #tpu.memory_space<vmem>>, vector<1x32xf32>,
    %c0_113 = arith.constant 0 : index
    %c0_114 = arith.constant 0 : index
    %208 = vector.load %arg9[%c0_113, %c0_114] : memref<1x32xf32, #tpu.memory_space<vmem>>, vector<1x32xf32>
    tpu.vector_store %arg9[%c0_113, %c0_114], %206 {strides = array<i32>} : memref<1x32xf32, #tpu.memory_space<vmem>>, vector<1x32xf32>,
    %c0_115 = arith.constant 0 : index
    %209 = arith.index_cast %c5_i32 : i32 to index
    %c0_116 = arith.constant 0 : index
    %210 = vector.load %arg3[%c0_115, %209, %c0_116] : memref<1x8x1xf32, #tpu.memory_space<vmem>>, vector<1x1x1xf32>
    %211 = vector.shape_cast %210 : vector<1x1x1xf32> to vector<1x1xf32>
    %212 = vector.broadcast %211 : vector<1x1xf32> to vector<1x32xf32>
    %213 = arith.mulf %206, %212 : vector<1x32xf32>
    %214 = vector.shape_cast %213 : vector<1x32xf32> to vector<1x1x32xf32>
    %c0_117 = arith.constant 0 : index
    %215 = arith.index_cast %c5_i32 : i32 to index
    %c0_118 = arith.constant 0 : index
    %216 = vector.load %arg7[%c0_117, %215, %c0_118] : memref<1x8x32xf32, #tpu.memory_space<vmem>>, vector<1x1x32xf32>
    tpu.vector_store %arg7[%c0_117, %215, %c0_118], %214 {strides = array<i32>} : memref<1x8x32xf32, #tpu.memory_space<vmem>>, vector<1x1x32xf32>,
    %c6_i32 = arith.constant 6 : i32
    %c0_119 = arith.constant 0 : index
    %217 = arith.index_cast %c6_i32 : i32 to index
    %c0_120 = arith.constant 0 : index
    %218 = vector.load %arg8[%c0_119, %217, %c0_120] : memref<1x8x128xf32, #tpu.memory_space<vmem>>, vector<1x1x128xf32>
    %219 = vector.shape_cast %218 : vector<1x1x128xf32> to vector<1x128xf32>
    %c0_121 = arith.constant 0 : index
    %c0_122 = arith.constant 0 : index
    %220 = vector.load %arg9[%c0_121, %c0_122] : memref<1x32xf32, #tpu.memory_space<vmem>>, vector<1x32xf32>
    %c0_123 = arith.constant 0 : index
    %c0_124 = arith.constant 0 : index
    %221 = vector.load %arg6[%c0_123, %c0_124] : memref<32x128xf32, #tpu.memory_space<vmem>>, vector<32x128xf32>
    %cst_125 = arith.constant dense<0.000000e+00> : vector<1x128xf32>
    %222 = tpu.matmul %220, %221, %cst_125 {dimension_numbers = #tpu.dot_dimension_numbers<[1], [0], [0], [1], [0, 0, 1, 1], [], []>} : vector<1x32xf32>, vector<32x128xf32>, vector<1x128xf32> -> vector<1x128xf32>
    %223 = arith.addf %219, %222 : vector<1x128xf32>
    %224 = vector.extract_strided_slice %223 {offsets = [0, 0], sizes = [1, 96], strides = [1, 1]} : vector<1x128xf32> to vector<1x96xf32>
    %225 = arith.negf %224 : vector<1x96xf32>
    %226 = math.exp %225 : vector<1x96xf32>
    %cst_126 = arith.constant 1.000000e+00 : f32
    %227 = vector.broadcast %cst_126 : f32 to vector<1x96xf32>
    %228 = arith.addf %227, %226 : vector<1x96xf32>
    %229 = arith.divf %227, %228 : vector<1x96xf32>
    %230 = vector.extract_strided_slice %229 {offsets = [0, 0], sizes = [1, 32], strides = [1, 1]} : vector<1x96xf32> to vector<1x32xf32>
    %231 = vector.extract_strided_slice %229 {offsets = [0, 32], sizes = [1, 32], strides = [1, 1]} : vector<1x96xf32> to vector<1x32xf32>
    %232 = vector.extract_strided_slice %229 {offsets = [0, 64], sizes = [1, 32], strides = [1, 1]} : vector<1x96xf32> to vector<1x32xf32>
    %233 = vector.extract_strided_slice %223 {offsets = [0, 96], sizes = [1, 32], strides = [1, 1]} : vector<1x128xf32> to vector<1x32xf32>
    %234 = math.tanh %233 : vector<1x32xf32>
    %c0_127 = arith.constant 0 : index
    %c0_128 = arith.constant 0 : index
    %235 = vector.load %arg10[%c0_127, %c0_128] : memref<1x32xf32, #tpu.memory_space<vmem>>, vector<1x32xf32>
    %236 = arith.mulf %231, %235 : vector<1x32xf32>
    %237 = arith.mulf %230, %234 : vector<1x32xf32>
    %238 = arith.addf %236, %237 : vector<1x32xf32>
    %239 = math.tanh %238 : vector<1x32xf32>
    %240 = arith.mulf %232, %239 : vector<1x32xf32>
    %c0_129 = arith.constant 0 : index
    %c0_130 = arith.constant 0 : index
    %241 = vector.load %arg10[%c0_129, %c0_130] : memref<1x32xf32, #tpu.memory_space<vmem>>, vector<1x32xf32>
    tpu.vector_store %arg10[%c0_129, %c0_130], %238 {strides = array<i32>} : memref<1x32xf32, #tpu.memory_space<vmem>>, vector<1x32xf32>,
    %c0_131 = arith.constant 0 : index
    %c0_132 = arith.constant 0 : index
    %242 = vector.load %arg9[%c0_131, %c0_132] : memref<1x32xf32, #tpu.memory_space<vmem>>, vector<1x32xf32>
    tpu.vector_store %arg9[%c0_131, %c0_132], %240 {strides = array<i32>} : memref<1x32xf32, #tpu.memory_space<vmem>>, vector<1x32xf32>,
    %c0_133 = arith.constant 0 : index
    %243 = arith.index_cast %c6_i32 : i32 to index
    %c0_134 = arith.constant 0 : index
    %244 = vector.load %arg3[%c0_133, %243, %c0_134] : memref<1x8x1xf32, #tpu.memory_space<vmem>>, vector<1x1x1xf32>
    %245 = vector.shape_cast %244 : vector<1x1x1xf32> to vector<1x1xf32>
    %246 = vector.broadcast %245 : vector<1x1xf32> to vector<1x32xf32>
    %247 = arith.mulf %240, %246 : vector<1x32xf32>
    %248 = vector.shape_cast %247 : vector<1x32xf32> to vector<1x1x32xf32>
    %c0_135 = arith.constant 0 : index
    %249 = arith.index_cast %c6_i32 : i32 to index
    %c0_136 = arith.constant 0 : index
    %250 = vector.load %arg7[%c0_135, %249, %c0_136] : memref<1x8x32xf32, #tpu.memory_space<vmem>>, vector<1x1x32xf32>
    tpu.vector_store %arg7[%c0_135, %249, %c0_136], %248 {strides = array<i32>} : memref<1x8x32xf32, #tpu.memory_space<vmem>>, vector<1x1x32xf32>,
    %c7_i32 = arith.constant 7 : i32
    %c0_137 = arith.constant 0 : index
    %251 = arith.index_cast %c7_i32 : i32 to index
    %c0_138 = arith.constant 0 : index
    %252 = vector.load %arg8[%c0_137, %251, %c0_138] : memref<1x8x128xf32, #tpu.memory_space<vmem>>, vector<1x1x128xf32>
    %253 = vector.shape_cast %252 : vector<1x1x128xf32> to vector<1x128xf32>
    %c0_139 = arith.constant 0 : index
    %c0_140 = arith.constant 0 : index
    %254 = vector.load %arg9[%c0_139, %c0_140] : memref<1x32xf32, #tpu.memory_space<vmem>>, vector<1x32xf32>
    %c0_141 = arith.constant 0 : index
    %c0_142 = arith.constant 0 : index
    %255 = vector.load %arg6[%c0_141, %c0_142] : memref<32x128xf32, #tpu.memory_space<vmem>>, vector<32x128xf32>
    %cst_143 = arith.constant dense<0.000000e+00> : vector<1x128xf32>
    %256 = tpu.matmul %254, %255, %cst_143 {dimension_numbers = #tpu.dot_dimension_numbers<[1], [0], [0], [1], [0, 0, 1, 1], [], []>} : vector<1x32xf32>, vector<32x128xf32>, vector<1x128xf32> -> vector<1x128xf32>
    %257 = arith.addf %253, %256 : vector<1x128xf32>
    %258 = vector.extract_strided_slice %257 {offsets = [0, 0], sizes = [1, 96], strides = [1, 1]} : vector<1x128xf32> to vector<1x96xf32>
    %259 = arith.negf %258 : vector<1x96xf32>
    %260 = math.exp %259 : vector<1x96xf32>
    %cst_144 = arith.constant 1.000000e+00 : f32
    %261 = vector.broadcast %cst_144 : f32 to vector<1x96xf32>
    %262 = arith.addf %261, %260 : vector<1x96xf32>
    %263 = arith.divf %261, %262 : vector<1x96xf32>
    %264 = vector.extract_strided_slice %263 {offsets = [0, 0], sizes = [1, 32], strides = [1, 1]} : vector<1x96xf32> to vector<1x32xf32>
    %265 = vector.extract_strided_slice %263 {offsets = [0, 32], sizes = [1, 32], strides = [1, 1]} : vector<1x96xf32> to vector<1x32xf32>
    %266 = vector.extract_strided_slice %263 {offsets = [0, 64], sizes = [1, 32], strides = [1, 1]} : vector<1x96xf32> to vector<1x32xf32>
    %267 = vector.extract_strided_slice %257 {offsets = [0, 96], sizes = [1, 32], strides = [1, 1]} : vector<1x128xf32> to vector<1x32xf32>
    %268 = math.tanh %267 : vector<1x32xf32>
    %c0_145 = arith.constant 0 : index
    %c0_146 = arith.constant 0 : index
    %269 = vector.load %arg10[%c0_145, %c0_146] : memref<1x32xf32, #tpu.memory_space<vmem>>, vector<1x32xf32>
    %270 = arith.mulf %265, %269 : vector<1x32xf32>
    %271 = arith.mulf %264, %268 : vector<1x32xf32>
    %272 = arith.addf %270, %271 : vector<1x32xf32>
    %273 = math.tanh %272 : vector<1x32xf32>
    %274 = arith.mulf %266, %273 : vector<1x32xf32>
    %c0_147 = arith.constant 0 : index
    %c0_148 = arith.constant 0 : index
    %275 = vector.load %arg10[%c0_147, %c0_148] : memref<1x32xf32, #tpu.memory_space<vmem>>, vector<1x32xf32>
    tpu.vector_store %arg10[%c0_147, %c0_148], %272 {strides = array<i32>} : memref<1x32xf32, #tpu.memory_space<vmem>>, vector<1x32xf32>,
    %c0_149 = arith.constant 0 : index
    %c0_150 = arith.constant 0 : index
    %276 = vector.load %arg9[%c0_149, %c0_150] : memref<1x32xf32, #tpu.memory_space<vmem>>, vector<1x32xf32>
    tpu.vector_store %arg9[%c0_149, %c0_150], %274 {strides = array<i32>} : memref<1x32xf32, #tpu.memory_space<vmem>>, vector<1x32xf32>,
    %c0_151 = arith.constant 0 : index
    %277 = arith.index_cast %c7_i32 : i32 to index
    %c0_152 = arith.constant 0 : index
    %278 = vector.load %arg3[%c0_151, %277, %c0_152] : memref<1x8x1xf32, #tpu.memory_space<vmem>>, vector<1x1x1xf32>
    %279 = vector.shape_cast %278 : vector<1x1x1xf32> to vector<1x1xf32>
    %280 = vector.broadcast %279 : vector<1x1xf32> to vector<1x32xf32>
    %281 = arith.mulf %274, %280 : vector<1x32xf32>
    %282 = vector.shape_cast %281 : vector<1x32xf32> to vector<1x1x32xf32>
    %c0_153 = arith.constant 0 : index
    %283 = arith.index_cast %c7_i32 : i32 to index
    %c0_154 = arith.constant 0 : index
    %284 = vector.load %arg7[%c0_153, %283, %c0_154] : memref<1x8x32xf32, #tpu.memory_space<vmem>>, vector<1x1x32xf32>
    tpu.vector_store %arg7[%c0_153, %283, %c0_154], %282 {strides = array<i32>} : memref<1x8x32xf32, #tpu.memory_space<vmem>>, vector<1x1x32xf32>,
    %c8_i32 = arith.constant 8 : i32
    return
  }
  func.func @transform_0(%arg0: i32, %arg1: i32) -> (i32, i32, i32) {
    %c0_i32 = arith.constant 0 : i32
    %c0_i32_0 = arith.constant 0 : i32
    return %arg0, %arg1, %c0_i32 : i32, i32, i32
  }
  func.func @transform_1(%arg0: i32, %arg1: i32) -> (i32, i32, i32) {
    %c0_i32 = arith.constant 0 : i32
    %c0_i32_0 = arith.constant 0 : i32
    return %arg0, %arg1, %c0_i32 : i32, i32, i32
  }
  func.func @transform_2(%arg0: i32, %arg1: i32) -> (i32, i32) {
    %c0_i32 = arith.constant 0 : i32
    %c0_i32_0 = arith.constant 0 : i32
    %c0_i32_1 = arith.constant 0 : i32
    return %c0_i32, %c0_i32_0 : i32, i32
  }
  func.func @transform_3(%arg0: i32, %arg1: i32) -> (i32, i32) {
    %c0_i32 = arith.constant 0 : i32
    %c0_i32_0 = arith.constant 0 : i32
    %c0_i32_1 = arith.constant 0 : i32
    return %c0_i32, %c0_i32_0 : i32, i32
  }
  func.func @transform_4(%arg0: i32, %arg1: i32) -> (i32, i32) {
    %c0_i32 = arith.constant 0 : i32
    %c0_i32_0 = arith.constant 0 : i32
    %c0_i32_1 = arith.constant 0 : i32
    return %c0_i32, %c0_i32_0 : i32, i32
  }
  func.func @transform_5(%arg0: i32, %arg1: i32) -> (i32, i32, i32) {
    %c0_i32 = arith.constant 0 : i32
    %c0_i32_0 = arith.constant 0 : i32
    return %arg0, %arg1, %c0_i32 : i32, i32, i32
  }
}

</mosaic_0001>

<bundles_post_ra>
// kernel: encoder_forward.3
= control target key start
LH: loop header
LB: loop body
LE: loop exit
PB: predicated region body
PF: predicated region fallthrough
CT: control target
= control target key end

     0   :  { %s2132_s0 = inlined_call_operand.vmem [shape: f32[2,8,32], index: 0, kind: input, shape index: {}]   ;;  %s2133_s1 = inlined_call_operand.vmem [shape: f32[2,8,4], index: 1, kind: input, shape index: {}]   ;;  %s2134_s2 = inlined_call_operand.vmem [shape: bf16[32,96], index: 2, kind: input, shape index: {}]   ;;  %s2135_s3 = inlined_call_operand.vmem [shape: f32[1,96], index: 3, kind: input, shape index: {}]   ;;  %s2136_s4 = inlined_call_operand.vmem [shape: bf16[32,32], index: 4, kind: input, shape index: {}]   ;;  %s2137_s5 = inlined_call_operand.vmem [shape: f32[1,32], index: 5, kind: input, shape index: {}]   ;;  %s2138_s6 = inlined_call_operand.vmem [shape: f32[1,32], index: 6, kind: input, shape index: {}]   ;;  %s2139_s7 = inlined_call_operand.vmem [shape: f32[1,32], index: 7, kind: input, shape index: {}]   ;;  %s2140_s8 = inlined_call_operand.vmem [shape: bf16[32,128], index: 8, kind: input, shape index: {}]   ;;  %s2141_s9 = inlined_call_operand.vmem [shape: f32[1,128], index: 9, kind: input, shape index: {}]   ;;  %s2142_s10 = inlined_call_operand.vmem [shape: bf16[128,32], index: 10, kind: input, shape index: {}]   ;;  %s2143_s11 = inlined_call_operand.vmem [shape: f32[1,32], index: 11, kind: input, shape index: {}]   ;;  %s2144_s12 = inlined_call_operand.vmem [shape: f32[1,32], index: 12, kind: input, shape index: {}]   ;;  %s2145_s13 = inlined_call_operand.vmem [shape: f32[1,32], index: 13, kind: input, shape index: {}]   ;;  %s2146_s14 = inlined_call_operand.hbm [shape: f32[2,8,32], index: 14, kind: output, shape index: {}]  }
   0x1   :  { %2148 = sst [smem:[#allocation6_spill]] %s2132_s0 }
   0x2   :  { %2149 = sst [smem:[#allocation7_spill]] %s2133_s1 }
   0x3   :  { %2150 = sst [smem:[#allocation8_spill]] %s2134_s2 }
   0x4   :  { %2151 = sst [smem:[#allocation9_spill]] %s2135_s3 }
   0x5   :  { %2152 = sst [smem:[#allocation10_spill]] %s2136_s4 }
   0x6   :  { %2153 = sst [smem:[#allocation11_spill]] %s2137_s5 }
   0x7   :  { %19 = vsyncpa [#allocation4], 0 }
   0x8   :  { %21 = vsyncpa [#allocation4 + $0x1], 0  ;;  %s1867_s29 = smov 0   ;;  %s1869_s30 = smov 0  }
   0x9   :  { %s1871_s15 = smov 0   ;;  %s1873_s16 = smov 0  }
   0xa LB: > { %s1888_s17 = sadd.s32 4294967295, %s1769_s16   ;;  %s1441_s18 = sadd.s32 4294967294, %s1769_s16   ;;  %s1769_s16 = sphi %s1873_s16, %s2166_s16   ;;  %s1765_s15 = sphi %s1871_s15, %s2165_s15   ;;  %s1761_s30 = sphi %s1869_s30, %s2164_s30   ;;  %s1757_s29 = sphi %s1867_s29, %s2163_s29  }
   0xb   : > { %s1892_s19 = sadd.s32 1, %s1769_s16   ;;  %s338_s20 = sadd.s32 1, %s1765_s15 }
   0xc   : > { %s335_s21 = ssub.s32 %s1769_s16, %s1892_s19  ;;  %p348_p0 = scmp.ne.s32.totalorder %s1765_s15, %s1761_s30 }
   0xd   : > { %p336_p1 = scmp.eq.s32.totalorder %s335_s21, 0  ;;  %p349_p2 = scmp.eq.s32.totalorder %s1888_s17, 1 }
   0xe   : > { %p354_p3 = scmp.ne.s32.totalorder %s1761_s30, %s1757_s29  ;;  %p355_p4 = scmp.eq.s32.totalorder %s1441_s18, 1 }
   0xf   : > { %s1903_s22 = scalar_select %p336_p1, %s1765_s15, %s338_s20  }
  0x10   : > { %p1905_p5 = por %p349_p2, %p348_p0  ;;  %p1909_p6 = por %p355_p4, %p354_p3 }
  0x11   : > { %p1444_p7 = scmp.ge.s32.totalorder %s1769_s16, 1  ;;  %p423_p8 = scmp.lt.s32.totalorder %s1769_s16, 3 }
  0x13   : > { %p424_p9 = pnand %p1444_p7, %p423_p8 }
  0x14   : > { %s2156_s2 = sld [smem:[#allocation8_spill]] (!%p424_p9)  ;;  %p472_p10 = scmp.lt.s32.totalorder (!%p424_p9), %s1888_s17, 1 }
  0x15   : > { %427 = sbr.rel (%p424_p9) target bundleno = 2466 (0x9a2), region = 76  ;;  %s2157_s0 = sld [smem:[#allocation6_spill]] (!%p424_p9) }
  0x16   : > { %s2158_s3 = sld [smem:[#allocation9_spill]] (!%p424_p9)  ;;  %s1773_s21 = smov (!%p424_p9), 120  }
  0x17   : > { %s1774_s25 = smov (!%p424_p9), 96   ;;  %s1777_s27 = smov (!%p424_p9), 72  }
  0x18   : > { %s1778_s28 = smov (!%p424_p9), 112   ;;  %s2160_s1 = sld [smem:[#allocation7_spill]] (!%p424_p9) }
  0x19   : > { %s2161_s4 = sld [smem:[#allocation10_spill]] (!%p424_p9) }
  0x1a   : > { %v1675_v0 = vld [vmem:[%s2156_s2 + $0x8] sm:$0xff]   ;;  %v1771_v1 = vmov 0.0   ;;  %v1676_v2 = vld [vmem:[%s2156_s2] sm:$0xff]   ;;  %vm1772_vm0 = vmmov 0   ;;  %s1930_s18 = scalar_select %p472_p10, %s1888_s17, 1  ;;  %vm506_vm1 = vcmask 261120   ;;  %v551_v23 = vlaneseq }
  0x1b   : > { %1519 = vmatprep.subr.bf16.mxu0 %v1771_v1  ;;  %1539 = vmatprep.subr.bf16.mxu1 %v1771_v1  ;;  %vm560_vm2 = vcmask 64512   ;;  %vm626_vm4 = vcmask 1043456   ;;  %vm798_vm5 = vcmask 130112   ;;  %vm921_vm6 = vcmask 195712   ;;  %s2162_s5 = sld [smem:[#allocation11_spill]] }
  0x1c   : > { %1520 = vmatpush3.bf16.msra.mxu0 %v1675_v0  ;;  %1523 = vmatprep.mubr.msk.bf16.mxu0 %vm1772_vm0, %v1771_v1  ;;  %s2147_s20 = sshll.u32 %s1930_s18, 3  ;;  %v1448_v5 = vld [vmem:[%s2158_s3] ss:$0 sm:$0xff]  ;;  %v552_v24 = vshrl.u32 %v551_v23, 7  ;;  %v554_v25 = vand.u32 127, %v551_v23  ;;  %vm1044_vm7 = vcmask 261312  }
  0x1d   : > { %1521 = vmatprep.subr.bf16.mxu0 %v1771_v1  ;;  %1541 = vmatprep.mubr.msk.bf16.mxu1 %vm1772_vm0, %v1771_v1  ;;  %s475_s26 = scalar_lea.vmem %s2157_s0, %s2147_s20  ;;  %s1776_s20 = smov 88  }
  0x1e   : > { %v1939_v3 = vld [vmem:[%s475_s26] sm:$0xff]  ;;  %s1775_s26 = smov 80   ;;  %s1779_s0 = smov 104   ;;  %vm555_vm3 = vcmp.le.s32.totalorder %v554_v25, %v552_v24 }
  0x1f   : > { %v482_v4 = vpack.c.bf16 %v1939_v3, %v1939_v3 }
  0x20   : > { %1522 = vmatpush3.bf16.msra.mxu0 %v1676_v2 }
  0x21   : > { %1527 = vmatprep.subr.bf16.mxu0 %v1771_v1 }
  0x23   : > { %1524 = vmatmul.mubr.msk.bf16.vlgmr.msra.gmra.mxu0 %vm506_vm1, %v482_v4 }
  0x24   : > { %1529 = vmatprep.mubr.msk.bf16.mxu0 %vm1772_vm0, %v1771_v1 }
  0xe3   : > { %v544_v6 = vpop.f32.mrf.mxu0 }
  0xe4   : > { %v545_v7 = vadd.f32 %v1448_v5, %v544_v6 }
  0xe5   : > { %v1525_v8 = vpop.f32.mrf.mxu0 }
  0xe6   : > { %v1949_v9 = vpack.c.bf16 %v545_v7, %v545_v7 }
  0xe7   : > { %v547_v10 = vpop.f32.mrf.mxu0 }
  0xe8   : > { %677 = vrot.lane.b32.xlu1 %v1949_v9, %s1773_s21  ;;  %558 = vrot.lane.b32.xlu0 %v1949_v9, %s1774_s25  ;;  %s1782_s21 = smov 40   ;;  %s1783_s25 = smov 48  }
  0xe9   : > { %v1526_v11 = vpop.f32.mrf.mxu0 }
  0xec   : > { %802 = vrot.lane.b32.xlu1 %v1949_v9, %s1775_s26  ;;  %679 = vrot.lane.b32.xlu0 %v1949_v9, %s1776_s20  ;;  %s1781_s20 = smov 64   ;;  %s2159_s26 = sshll.u32 %s1930_s18, 3 }
  0xed   : > { %s1788_s18 = smov 8  }
  0xf0   : > { %925 = vrot.lane.b32.xlu1 %v1949_v9, %s1777_s27  ;;  %800 = vrot.lane.b32.xlu0 %v1949_v9, %s1778_s28  ;;  %s1789_s27 = smov 16   ;;  %s1790_s28 = smov 24  }
  0xf4   : > { %923 = vrot.lane.b32.xlu0 %v1949_v9, %s1779_s0  ;;  %s1780_s0 = smov 56  }
 0x15a   : > { %v559_v12 = vpop.permute.xlu0 %558  ;;  %v678_v14 = vpop.permute.xlu1 %677 }
 0x15b   : > { %v565_v13 = vsel %vm560_vm2, %v559_v12, 0 }
 0x15c   : > { %1528 = vmatpush3.bf16.xpose.msra.mxu0 %v565_v13  ;;  %v1784_v13 = vmov 1  }
 0x15d   : > { %1533 = vmatprep.subr.bf16.mxu0 %v1771_v1  ;;  %1670 = vset.pattern.permute.xlu1 %v1784_v13 }
 0x15e   : > { %v680_v15 = vpop.permute.xlu0 %679  ;;  %v803_v17 = vpop.permute.xlu1 %802 }
 0x15f   : > { %v685_v16 = vsel %vm560_vm2, %v680_v15, 0  ;;  %v808_v18 = vsel %vm560_vm2, %v803_v17, 0  ;;  %v1785_v15 = vmov 2   ;;  %v1787_v17 = vmov 0  }
 0x160   : > { %1540 = vmatpush3.bf16.xpose.msra.mxu1 %v685_v16  ;;  %1671 = vset.pattern.permute.xlu0 %v1785_v15  ;;  %v1786_v16 = vmov 3  }
 0x161   : > { %1551 = vmatprep.subr.bf16.mxu1 %v1771_v1 }
 0x162   : > { %v926_v19 = vpop.permute.xlu1 %925  ;;  %v801_v20 = vpop.permute.xlu0 %800 }
 0x163   : > { %1530 = vmatmul.mubr.msk.bf16.vlgmr.msra.gmra.mxu0 %vm560_vm2, %v1949_v9  ;;  %v931_v21 = vsel %vm560_vm2, %v926_v19, 0 }
 0x164   : > { %1535 = vmatprep.mubr.msk.bf16.mxu0 %vm1772_vm0, %v1771_v1 }
 0x166   : > { %v924_v22 = vpop.permute.xlu0 %923 }
 0x167   : > { %1542 = vmatmul.mubr.msk.bf16.vlgmr.msra.gmra.mxu1 %vm560_vm2, %v678_v14 }
 0x168   : > { %1552 = vmatpush3.bf16.xpose.msra.mxu1 %v808_v18  ;;  %1553 = vmatprep.mubr.msk.bf16.mxu1 %vm1772_vm0, %v1771_v1 }
 0x169   : > { %1563 = vmatprep.subr.bf16.mxu1 %v1771_v1 }
 0x16f   : > { %1554 = vmatmul.mubr.msk.bf16.vlgmr.msra.gmra.mxu1 %vm560_vm2, %v801_v20 }
 0x170   : > { %1564 = vmatpush3.bf16.xpose.msra.mxu1 %v931_v21  ;;  %1565 = vmatprep.mubr.msk.bf16.mxu1 %vm1772_vm0, %v1771_v1 }
 0x171   : > { %1575 = vmatprep.subr.bf16.mxu1 %v1771_v1 }
 0x177   : > { %1566 = vmatmul.mubr.msk.bf16.vlgmr.msra.gmra.mxu1 %vm560_vm2, %v924_v22 }
 0x178   : > { %1579 = vmatprep.mubr.msk.bf16.mxu1 %vm1772_vm0, %v1771_v1 }
 0x223   : > { %v601_v26 = vpop.f32.mrf.mxu0 }
 0x224   : > { %v607_v27 = vmul.f32 0.35355338, %v601_v26 }
 0x225   : > { %v1531_v28 = vpop.f32.mrf.mxu0 }
 0x226   : > { %v608_v29 = vsel %vm555_vm3, %v607_v27, -1e+30 }
 0x227   : > { %v604_v30 = vpop.f32.mrf.mxu0  ;;  %v721_v31 = vpop.f32.mrf.mxu1  ;;  %v609_v32 = vsel %vm560_vm2, %v608_v29, -inf }
 0x228   : > { %v727_v33 = vmul.f32 0.35355338, %v721_v31  ;;  %610 = vmax.xlane.f32.xlu1 %v609_v32 }
 0x229   : > { %v1532_v34 = vpop.f32.mrf.mxu0  ;;  %v1543_v35 = vpop.f32.mrf.mxu1 }
 0x22a   : > { %v728_v36 = vsel %vm555_vm3, %v727_v33, -1e+30 }
 0x22b   : > { %v724_v37 = vpop.f32.mrf.mxu1  ;;  %v729_v38 = vsel %vm560_vm2, %v728_v36, -inf }
 0x22c   : > { %730 = vmax.xlane.f32.xlu0 %v729_v38 }
 0x22d   : > { %v1544_v39 = vpop.f32.mrf.mxu1 }
 0x22f   : > { %v844_v40 = vpop.f32.mrf.mxu1 }
 0x230   : > { %v850_v41 = vmul.f32 0.35355338, %v844_v40 }
 0x231   : > { %v1555_v42 = vpop.f32.mrf.mxu1 }
 0x232   : > { %v851_v43 = vsel %vm555_vm3, %v850_v41, -1e+30 }
 0x233   : > { %v847_v44 = vpop.f32.mrf.mxu1  ;;  %v852_v45 = vsel %vm560_vm2, %v851_v43, -inf }
 0x234   : > { %853 = vmax.xlane.f32.xlu0 %v852_v45 }
 0x235   : > { %v1556_v46 = vpop.f32.mrf.mxu1 }
 0x237   : > { %v967_v47 = vpop.f32.mrf.mxu1 }
 0x238   : > { %v973_v48 = vmul.f32 0.35355338, %v967_v47 }
 0x239   : > { %v1567_v49 = vpop.f32.mrf.mxu1 }
 0x23a   : > { %v974_v50 = vsel %vm555_vm3, %v973_v48, -1e+30 }
 0x23b   : > { %v970_v51 = vpop.f32.mrf.mxu1  ;;  %v975_v52 = vsel %vm560_vm2, %v974_v50, -inf }
 0x23c   : > { %976 = vmax.xlane.f32.xlu1 %v975_v52 }
 0x23d   : > { %v1568_v53 = vpop.f32.mrf.mxu1 }
 0x2b1   : > { %v611_v54 = vpop.xlane.xlu1 %610 }
 0x2b2   : > { %v612_v55 = vsub.f32 %v608_v29, %v611_v54 }
 0x2b4   : > { %v613_v56 = vmul.f32 1.442695, %v612_v55 }
 0x2b5   : > { %v731_v57 = vpop.xlane.xlu0 %730 }
 0x2b6   : > { %1689 = vpow2.f32 %v613_v56  ;;  %v732_v58 = vsub.f32 %v728_v36, %v731_v57  ;;  %v1677_v56 = vld [vmem:[%s2161_s4 + $0x8] sm:$0xff]  }
 0x2b7   : > { %1576 = vmatpush3.bf16.msra.mxu1 %v1677_v56 }
 0x2b8   : > { %v733_v59 = vmul.f32 1.442695, %v732_v58  ;;  %1577 = vmatprep.subr.bf16.mxu1 %v1771_v1 }
 0x2ba   : > { %1691 = vpow2.f32 %v733_v59  ;;  %v1678_v59 = vld [vmem:[%s2161_s4] sm:$0xff]  }
 0x2bb   : > { %1578 = vmatpush3.bf16.msra.mxu1 %v1678_v59 }
 0x2bc   : > { %1591 = vmatprep.subr.bf16.mxu1 %v1771_v1 }
 0x2bd   : > { %v854_v60 = vpop.xlane.xlu0 %853 }
 0x2be   : > { %v855_v61 = vsub.f32 %v851_v43, %v854_v60 }
 0x2c0   : > { %v856_v62 = vmul.f32 1.442695, %v855_v61 }
 0x2c2   : > { %1693 = vpow2.f32 %v856_v62 }
 0x2c3   : > { %v1690_v63 = vpop.eup %1689 }
 0x2c4   : > { %v615_v0 = vsel %vm560_vm2, %v1690_v63, 0.0 }
 0x2c5   : > { %616 = vadd.xlane.f32.xlu0 %v615_v0  ;;  %v977_v7 = vpop.xlane.xlu1 %976 }
 0x2c6   : > { %v978_v8 = vsub.f32 %v974_v50, %v977_v7 }
 0x2c7   : > { %v1692_v2 = vpop.eup %1691 }
 0x2c8   : > { %v735_v4 = vsel %vm560_vm2, %v1692_v2, 0.0  ;;  %v979_v10 = vmul.f32 1.442695, %v978_v8 }
 0x2c9   : > { %736 = vadd.xlane.f32.xlu1 %v735_v4 }
 0x2ca   : > { %1695 = vpow2.f32 %v979_v10 }
 0x2cf   : > { %v1694_v5 = vpop.eup %1693 }
 0x2d0   : > { %v858_v6 = vsel %vm560_vm2, %v1694_v5, 0.0 }
 0x2d1   : > { %859 = vadd.xlane.f32.xlu0 %v858_v6 }
 0x2d7   : > { %v1696_v11 = vpop.eup %1695 }
 0x2d8   : > { %v981_v12 = vsel %vm560_vm2, %v1696_v11, 0.0 }
 0x2da   : > { %741 = vrot.lane.b32.xlu1 %v1949_v9, %s1780_s0  ;;  %s479_s0 = scalar_lea.vmem %s2160_s1, %s2159_s26 }
 0x2db   : > { %v550_v14 = vld [vmem:[%s479_s0] sm:$0xff] }
 0x2e7   : > { %621 = vrot.lane.b32.xlu0 %v1949_v9, %s1781_s20 }
 0x2eb   : > { %987 = vrot.lane.b32.xlu0 %v1949_v9, %s1782_s21 }
 0x2ef   : > { %913 = vperm.xlu0 %1671, %v550_v14  }
 0x2f3   : > { %1674 = vset.pattern.permute.xlu0 %v1786_v16 }
 0x2fe   : > { %982 = vadd.xlane.f32.xlu1 %v981_v12 }
 0x30f   : > { %864 = vrot.lane.b32.xlu1 %v1949_v9, %s1783_s25  ;;  %s1482_s25 = sshll.u32 %s1888_s17, 7 }
 0x310   : > { %s1368_s4 = scalar_lea.hbm %s2146_s14, %s1482_s25 }
 0x313   : > { %790 = vperm.xlu1 %1670, %v550_v14  }
 0x317   : > { %1672 = vset.pattern.permute.xlu1 %v1786_v16 }
 0x318   : > { %1036 = vperm.xlu1 %1672, %v550_v14  }
 0x31c   : > { %1673 = vset.pattern.permute.xlu1 %v1787_v17 }
 0x31d   : > { %672 = vperm.xlu1 %1673, %v550_v14  }
 0x34e   : > { %v617_v9 = vpop.xlane.xlu0 %616 }
 0x34f   : > { %1697 = vrcp.f32 %v617_v9 }
 0x352   : > { %v737_v18 = vpop.xlane.xlu1 %736 }
 0x353   : > { %1699 = vrcp.f32 %v737_v18 }
 0x356   : > { %v742_v24 = vpop.permute.xlu1 %741 }
 0x357   : > { %v747_v27 = vsel %vm626_vm4, %v742_v24, 0  ;;  %v1681_v24 = vld [vmem:[%s2142_s10 + $0x38] sm:$0xff]  }
 0x35a   : > { %v860_v19 = vpop.xlane.xlu0 %859 }
 0x35b   : > { %1701 = vrcp.f32 %v860_v19 }
 0x35c   : > { %v1698_v20 = vpop.eup %1697 }
 0x35d   : > { %v619_v21 = vmul.f32 %v1698_v20, %v1690_v63 }
 0x35e   : > { %v622_v22 = vpop.permute.xlu0 %621 }
 0x35f   : > { %v628_v23 = vsel %vm626_vm4, %v622_v22, 0  ;;  %v620_v25 = vpack.c.bf16 %v619_v21, %v619_v21 }
 0x360   : > { %1534 = vmatpush3.bf16.msra.mxu0 %v628_v23  ;;  %v1700_v26 = vpop.eup %1699  ;;  %v1679_v23 = vld [vmem:[%s2140_s8 + $0x8] sm:$0xff]  }
 0x361   : > { %1545 = vmatprep.subr.bf16.mxu0 %v1771_v1  ;;  %v739_v28 = vmul.f32 %v1700_v26, %v1692_v2  ;;  %v1683_v26 = vld [vmem:[%s2142_s10 + $0x28] sm:$0xff]  }
 0x362   : > { %v988_v35 = vpop.permute.xlu0 %987 }
 0x363   : > { %1536 = vmatmul.mubr.msk.bf16.vlgmr.msra.gmra.mxu0 %vm560_vm2, %v620_v25  ;;  %v740_v29 = vpack.c.bf16 %v739_v28, %v739_v28  ;;  %v993_v37 = vsel %vm626_vm4, %v988_v35, 0  ;;  %v1682_v25 = vld [vmem:[%s2142_s10 + $0x30] sm:$0xff]   ;;  %v1685_v28 = vld [vmem:[%s2142_s10 + $0x18] sm:$0xff]  }
 0x364   : > { %1546 = vmatpush3.bf16.msra.mxu0 %v747_v27  ;;  %1547 = vmatprep.mubr.msk.bf16.mxu0 %vm1772_vm0, %v1771_v1  ;;  %v1684_v27 = vld [vmem:[%s2142_s10 + $0x20] sm:$0xff]  }
 0x365   : > { %1557 = vmatprep.subr.bf16.mxu0 %v1771_v1 }
 0x368   : > { %v1702_v30 = vpop.eup %1701 }
 0x369   : > { %v862_v32 = vmul.f32 %v1702_v30, %v1694_v5 }
 0x36a   : > { %v914_v54 = vpop.permute.xlu0 %913 }
 0x36b   : > { %1548 = vmatmul.mubr.msk.bf16.vlgmr.msra.gmra.mxu0 %vm560_vm2, %v740_v29  ;;  %v863_v36 = vpack.c.bf16 %v862_v32, %v862_v32  ;;  %v1686_v29 = vld [vmem:[%s2142_s10 + $0x10] sm:$0xff]  }
 0x36c   : > { %1559 = vmatprep.mubr.msk.bf16.mxu0 %vm1772_vm0, %v1771_v1 }
 0x387   : > { %v983_v31 = vpop.xlane.xlu1 %982 }
 0x388   : > { %1703 = vrcp.f32 %v983_v31 }
 0x38b   : > { %v865_v33 = vpop.permute.xlu1 %864 }
 0x38c   : > { %v870_v34 = vsel %vm626_vm4, %v865_v33, 0 }
 0x38d   : > { %1558 = vmatpush3.bf16.msra.mxu0 %v870_v34  ;;  %v1464_v34 = vld [vmem:[%s2138_s6] ss:$0 sm:$0xff] }
 0x38e   : > { %1569 = vmatprep.subr.bf16.mxu0 %v1771_v1 }
 0x38f   : > { %v791_v41 = vpop.permute.xlu1 %790 }
 0x390   : > { %1560 = vmatmul.mubr.msk.bf16.vlgmr.msra.gmra.mxu0 %vm560_vm2, %v863_v36  ;;  %v1465_v36 = vld [vmem:[%s2139_s7] ss:$0 sm:$0xff] }
 0x391   : > { %1570 = vmatpush3.bf16.msra.mxu0 %v993_v37  ;;  %1571 = vmatprep.mubr.msk.bf16.mxu0 %vm1772_vm0, %v1771_v1 }
 0x392   : > { %1583 = vmatprep.subr.bf16.mxu0 %v1771_v1 }
 0x393   : > { %v1037_v42 = vpop.permute.xlu1 %1036 }
 0x395   : > { %v1704_v38 = vpop.eup %1703 }
 0x396   : > { %v985_v39 = vmul.f32 %v1704_v38, %v1696_v11  ;;  %v1460_v11 = vld [vmem:[%s2162_s5] ss:$0 sm:$0xff] }
 0x398   : > { %v986_v40 = vpack.c.bf16 %v985_v39, %v985_v39  ;;  %v673_v43 = vpop.permute.xlu1 %672 }
 0x39a   : > { %1572 = vmatmul.mubr.msk.bf16.vlgmr.msra.gmra.mxu0 %vm560_vm2, %v986_v40  ;;  %v1687_v40 = vld [vmem:[%s2142_s10 + $0x8] sm:$0xff]  }
 0x39b   : > { %1587 = vmatprep.mubr.msk.bf16.mxu0 %vm1772_vm0, %v1771_v1  ;;  %1584 = vmatpush3.bf16.msra.mxu0 %v1679_v23 }
 0x39c   : > { %1585 = vmatprep.subr.bf16.mxu0 %v1771_v1 }
 0x423   : > { %v664_v44 = vpop.f32.mrf.mxu0 }
 0x424   : > { %v675_v45 = vmul.f32 %v673_v43, %v664_v44 }
 0x425   : > { %v1537_v46 = vpop.f32.mrf.mxu0 }
 0x426   : > { %676 = vst.msk [vmem:[#allocation2] sm:$0xff] %vm560_vm2, %v675_v45 }
 0x427   : > { %v667_v47 = vpop.f32.mrf.mxu0 }
 0x429   : > { %v1538_v48 = vpop.f32.mrf.mxu0 }
 0x42b   : > { %v783_v49 = vpop.f32.mrf.mxu0 }
 0x42c   : > { %v793_v50 = vmul.f32 %v791_v41, %v783_v49  ;;  %v1688_v41 = vld [vmem:[%s2142_s10] sm:$0xff]  }
 0x42d   : > { %v1549_v51 = vpop.f32.mrf.mxu0 }
 0x42e   : > { %795 = vrot.lane.b32.xlu0 %v793_v50, %s1788_s18  ;;  %s1791_s18 = smov [#allocation3]  }
 0x42f   : > { %v786_v52 = vpop.f32.mrf.mxu0  ;;  %s1713_s20 = sshll.u32 %s1791_s18, 4  ;;  %s1714_s20 = int_to_ptr.vmem [resolvable:$false] %s1713_s20 }
 0x430   : > { %s1715_s17 = scalar_lea.vmem %s1714_s20, 256 }
 0x431   : > { %v1550_v53 = vpop.f32.mrf.mxu0 }
 0x450   : > { %v906_v55 = vpop.f32.mrf.mxu0 }
 0x451   : > { %v916_v57 = vmul.f32 %v914_v54, %v906_v55 }
 0x452   : > { %v1561_v58 = vpop.f32.mrf.mxu0 }
 0x453   : > { %918 = vrot.lane.b32.xlu1 %v916_v57, %s1789_s27  ;;  %s469_s27 = sand.u32 1, %s1761_s30  }
 0x454   : > { %v909_v60 = vpop.f32.mrf.mxu0  ;;  %s1357_s5 = scalar_lea.sflag [#allocation4], %s469_s27 }
 0x456   : > { %v1562_v61 = vpop.f32.mrf.mxu0 }
 0x45a   : > { %v1029_v62 = vpop.f32.mrf.mxu0 }
 0x45b   : > { %v1039_v63 = vmul.f32 %v1037_v42, %v1029_v62  ;;  %v1466_v42 = vld [vmem:[%s2141_s9] ss:$0 sm:$0xff] }
 0x45c   : > { %v1573_v0 = vpop.f32.mrf.mxu0 }
 0x45d   : > { %1041 = vrot.lane.b32.xlu0 %v1039_v63, %s1790_s28  ;;  %s1445_s28 = sshll.u32 %s469_s27, 3 }
 0x45e   : > { %v1032_v2 = vpop.f32.mrf.mxu0  ;;  %s471_s26 = scalar_lea.vmem [#allocation3], %s1445_s28 }
 0x45f   : > { %s1370_s1 = sshll.u32 %s471_s26, 4  ;;  %s1371_s1 = int_to_ptr.vmem [resolvable:$true] %s1370_s1 }
 0x460   : > { %v1574_v4 = vpop.f32.mrf.mxu0  ;;  %s1709_s0 = scalar_lea.vmem %s1371_s1, 128  ;;  %p1716_p0 = scmp.lt.s32.totalorder %s1371_s1, %s1714_s20 }
 0x461   : > { %v1479_v4 = vld [vmem:[%s2144_s12] ss:$0 sm:$0xff]  ;;  %p1710_p11 = scmp.ne.s32.totalorder %s1371_s1, %s1709_s0  ;;  %p1717_p1 = scmp.lt.s32.totalorder %s1715_s17, %s1709_s0 }
 0x463   : > { %p1711_p12 = pnand %p1710_p11, %p1905_p5  ;;  %p1718_p2 = por %p1717_p1, %p1716_p0 }
 0x465   : > { %p1712_p13 = pneg %p1711_p12 }
 0x467   : > { %p1719_p3 = pnand %p1718_p2, %p1712_p13 }
 0x4a0   : > { %v796_v5 = vpop.permute.xlu0 %795 }
 0x4a1   : > { %799 = vst.msk [vmem:[#allocation2] sm:$0xff] %vm798_vm5, %v796_v5 }
 0x4c5   : > { %v919_v6 = vpop.permute.xlu1 %918 }
 0x4c6   : > { %922 = vst.msk [vmem:[#allocation2] sm:$0xff] %vm921_vm6, %v919_v6  ;;  %v1480_v6 = vld [vmem:[%s2145_s13] ss:$0 sm:$0xff] }
 0x4cf   : > { %v1042_v7 = vpop.permute.xlu0 %1041 }
 0x4d0   : > { %1045 = vst.msk [vmem:[#allocation2] sm:$0xff] %vm1044_vm7, %v1042_v7 }
 0x4d7   : > { %v1046_v8 = vld [vmem:[#allocation2] sm:$0xff] }
 0x4d8   : > { %v1047_v10 = vpack.c.bf16 %v1046_v8, %v1046_v8 }
 0x4da   : > { %1580 = vmatmul.mubr.msk.bf16.vlgmr.msra.gmra.mxu1 %vm506_vm1, %v1047_v10 }
 0x4db   : > { %1607 = vmatprep.mubr.msk.bf16.mxu1 %vm1772_vm0, %v1771_v1  ;;  %1592 = vmatpush3.bf16.msra.mxu1 %v1681_v24 }
 0x4dc   : > { %1593 = vmatprep.subr.bf16.mxu1 %v1771_v1 }
 0x4df   : > { %1594 = vmatpush3.bf16.msra.mxu1 %v1682_v25 }
 0x4e0   : > { %1595 = vmatprep.subr.bf16.mxu1 %v1771_v1 }
 0x4e3   : > { %1596 = vmatpush3.bf16.msra.mxu1 %v1683_v26 }
 0x4e4   : > { %1597 = vmatprep.subr.bf16.mxu1 %v1771_v1 }
 0x4e7   : > { %1598 = vmatpush3.bf16.msra.mxu1 %v1684_v27 }
 0x4e8   : > { %1599 = vmatprep.subr.bf16.mxu1 %v1771_v1 }
 0x4eb   : > { %1600 = vmatpush3.bf16.msra.mxu1 %v1685_v28 }
 0x4ec   : > { %1601 = vmatprep.subr.bf16.mxu1 %v1771_v1 }
 0x4ef   : > { %1602 = vmatpush3.bf16.msra.mxu1 %v1686_v29 }
 0x4f0   : > { %1603 = vmatprep.subr.bf16.mxu1 %v1771_v1 }
 0x4f3   : > { %1604 = vmatpush3.bf16.msra.mxu1 %v1687_v40 }
 0x4f4   : > { %1605 = vmatprep.subr.bf16.mxu1 %v1771_v1  ;;  %v1470_v1 = vld [vmem:[%s2143_s11] ss:$0 sm:$0xff] }
 0x4f7   : > { %1606 = vmatpush3.bf16.msra.mxu1 %v1688_v41 }
 0x59a   : > { %v1108_v12 = vpop.f32.mrf.mxu1 }
 0x59b   : > { %v1109_v13 = vadd.f32 %v1460_v11, %v1108_v12 }
 0x59c   : > { %v1581_v14 = vpop.f32.mrf.mxu1 }
 0x59d   : > { %v1114_v15 = vadd.f32 %v1109_v13, %v1939_v3  ;;  %v1680_v3 = vld [vmem:[%s2140_s8] sm:$0xff]  }
 0x59e   : > { %v1111_v16 = vpop.f32.mrf.mxu1  ;;  %1586 = vmatpush3.bf16.msra.mxu0 %v1680_v3 }
 0x59f   : > { %v1115_v17 = vsel %vm506_vm1, %v1114_v15, 0.0 }
 0x5a0   : > { %1116 = vadd.xlane.f32.xlu1 %v1115_v17  ;;  %v1582_v9 = vpop.f32.mrf.mxu1 }
 0x629   : > { %v1117_v18 = vpop.xlane.xlu1 %1116 }
 0x62a   : > { %v1119_v19 = vmul.f32 0.03125, %v1117_v18 }
 0x62c   : > { %v1120_v20 = vsub.f32 %v1114_v15, %v1119_v19 }
 0x62e   : > { %v1121_v21 = vmul.f32 %v1120_v20, %v1120_v20 }
 0x630   : > { %v1122_v22 = vsel %vm506_vm1, %v1121_v21, 0.0 }
 0x631   : > { %1123 = vadd.xlane.f32.xlu0 %v1122_v22 }
 0x6ba   : > { %v1124_v30 = vpop.xlane.xlu0 %1123 }
 0x6bb   : > { %v1125_v31 = vmul.f32 0.03125, %v1124_v30 }
 0x6bd   : > { %v1126_v32 = vadd.f32 1e-05, %v1125_v31 }
 0x6bf   : > { %1705 = vrsqrt.f32 %v1126_v32 }
 0x6cc   : > { %v1706_v33 = vpop.eup %1705 }
 0x6cd   : > { %v1128_v35 = vmul.f32 %v1706_v33, %v1120_v20 }
 0x6cf   : > { %v1136_v37 = vmul.f32 %v1464_v34, %v1128_v35 }
 0x6d1   : > { %v1144_v38 = vadd.f32 %v1465_v36, %v1136_v37 }
 0x6d3   : > { %v1145_v39 = vpack.c.bf16 %v1144_v38, %v1144_v38 }
 0x6d5   : > { %1588 = vmatmul.mubr.msk.bf16.vlgmr.msra.gmra.mxu0 %vm506_vm1, %v1145_v39 }
 0x795   : > { %v1206_v43 = vpop.f32.mrf.mxu0 }
 0x796   : > { %v1207_v44 = vadd.f32 %v1466_v42, %v1206_v43 }
 0x797   : > { %v1589_v45 = vpop.f32.mrf.mxu0 }
 0x798   : > { %v1212_v46 = vmax.f32 %v1207_v44, 0.0 }
 0x799   : > { %v1209_v47 = vpop.f32.mrf.mxu0 }
 0x79a   : > { %v1213_v48 = vpack.c.bf16 %v1212_v46, %v1212_v46 }
 0x79b   : > { %v1590_v49 = vpop.f32.mrf.mxu0 }
 0x79c   : > { %1608 = vmatmul.mubr.bf16.vlgmr.msra.gmra.mxu1 %v1213_v48 }
 0x85c   : > { %v1319_v50 = vpop.f32.mrf.mxu1 }
 0x85d   : > { %v1320_v51 = vadd.f32 %v1470_v1, %v1319_v50 }
 0x85e   : > { %v1609_v52 = vpop.f32.mrf.mxu1 }
 0x85f   : > { %v1325_v53 = vadd.f32 %v1320_v51, %v1144_v38 }
 0x860   : > { %v1322_v54 = vpop.f32.mrf.mxu1 }
 0x861   : > { %v1326_v55 = vsel %vm506_vm1, %v1325_v53, 0.0 }
 0x862   : > { %1327 = vadd.xlane.f32.xlu0 %v1326_v55  ;;  %v1610_v56 = vpop.f32.mrf.mxu1 }
 0x8eb   : > { %v1328_v57 = vpop.xlane.xlu0 %1327 }
 0x8ec   : > { %v1329_v58 = vmul.f32 0.03125, %v1328_v57 }
 0x8ee   : > { %v1330_v59 = vsub.f32 %v1325_v53, %v1329_v58 }
 0x8f0   : > { %v1331_v60 = vmul.f32 %v1330_v59, %v1330_v59 }
 0x8f2   : > { %v1332_v61 = vsel %vm506_vm1, %v1331_v60, 0.0 }
 0x8f3   : > { %1333 = vadd.xlane.f32.xlu1 %v1332_v61 }
 0x97c   : > { %v1334_v62 = vpop.xlane.xlu1 %1333 }
 0x97d   : > { %v1335_v63 = vmul.f32 0.03125, %v1334_v62 }
 0x97f   : > { %v1336_v0 = vadd.f32 1e-05, %v1335_v63 }
 0x981   : > { %1707 = vrsqrt.f32 %v1336_v0 }
 0x98e   : > { %v1708_v2 = vpop.eup %1707 }
 0x98f   : > { %v1338_v5 = vmul.f32 %v1708_v2, %v1330_v59 }
 0x991   : > { %v1346_v7 = vmul.f32 %v1479_v4, %v1338_v5 }
 0x993   : > { %v1354_v8 = vadd.f32 %v1480_v6, %v1346_v7 }
 0x995   : > { %1355 = vst.msk [vmem:[%s471_s26] sm:$0xff] %vm506_vm1, %v1354_v8 }
 0x996   : > { %1722 = shalt.err (!%p1719_p3)
}
 0x997   : > { %s1723_s2 = scalar_lea.hbm %s1368_s4, 128  ;;  %s1727_s28 = scalar_lea.hbm %s2146_s14, 256 }
 0x998   : > { %p1724_p4 = scmp.ne.s32.totalorder %s1368_s4, %s1723_s2  ;;  %p1728_p9 = scmp.lt.s32.totalorder %s1368_s4, %s2146_s14 }
 0x999   : > { %p1729_p10 = scmp.lt.s32.totalorder %s1727_s28, %s1723_s2 }
 0x99a   : > { %p1725_p7 = pnand %p1724_p4, %p1905_p5 }
 0x99b   : > { %p1730_p11 = por %p1729_p10, %p1728_p9 }
 0x99c   : > { %p1726_p8 = pneg %p1725_p7 }
 0x99e   : > { %p1731_p12 = pnand %p1730_p11, %p1726_p8 }
 0x9a0   : > { %1734 = shalt.err (!%p1731_p12)
}
 0x9a1   : > { %1611 = dma.vmem_to_hbm [thread:$0]  (%p1905_p5), %s1371_s1, 128, %s1368_s4, %s1357_s5  }
 0x9a2 PF: > { %p1617_p13 = scmp.ge.s32.totalorder %s1769_s16, 2  ;;  %s1382_s26 = sand.u32 1, %s1757_s29  }
 0x9a3   : > { %s1383_s0 = scalar_lea.sflag [#allocation4], %s1382_s26 }
 0x9a4   : > { %p1614_p0 = pnand %p1617_p13, %p1909_p6 }
 0x9a6   : > { %p1615_p1 = pneg %p1614_p0 }
 0x9a8   : > { %1752 = dma.done.wait (%p1615_p1), %s1383_s0, 128  }
 0x9a9   : > { %1754 = vsyncadd (%p1615_p1), %s1383_s0, 4294967168  ;;  %p24_p2 = scmp.ge.s32.totalorder %s1892_s19, 4   ;;  %s2163_s29 = smov %s1761_s30 }
 0x9aa   : > { %s2164_s30 = smov %s1765_s15  ;;  %s2165_s15 = smov %s1903_s22 }
 0x9ab   : > { %s2166_s16 = smov %s1892_s19  ;;  %26 = sbr.rel (!%p24_p2) target bundleno = 10 (0xa), region = 114 }
 0x9b0   :  { %1388 = vsyncpa [#allocation4], 1 }
 0x9b1   :  { %1390 = vsyncpa [#allocation4 + $0x1], 1 }

// kernel: encoder_forward.2
= control target key start
LH: loop header
LB: loop body
LE: loop exit
PB: predicated region body
PF: predicated region fallthrough
CT: control target
= control target key end

     0   :  { %s1852_s18 = smov 0   ;;  %s1854_s19 = smov 0   ;;  %s2141_s0 = inlined_call_operand.vmem [shape: bf16[2,8,12], index: 0, kind: input, shape index: {}]   ;;  %s2142_s1 = inlined_call_operand.vmem [shape: f32[2,8,1], index: 1, kind: input, shape index: {}]   ;;  %s2143_s2 = inlined_call_operand.vmem [shape: bf16[12,128], index: 2, kind: input, shape index: {}]   ;;  %s2144_s3 = inlined_call_operand.vmem [shape: f32[1,128], index: 3, kind: input, shape index: {}]   ;;  %s2145_s4 = inlined_call_operand.vmem [shape: f32[32,128], index: 4, kind: input, shape index: {}]   ;;  %s2146_s5 = inlined_call_operand.vmem [shape: f32[2,8,32], index: 5, kind: output, shape index: {}]  }
   0x1   :  { %s1856_s20 = smov 0  }
   0x2 LB: > { %s27_s21 = sadd.s32 1, %s1810_s19  ;;  %p1526_p0 = scmp.ge.s32.totalorder %s1814_s20, 1  ;;  %s1814_s20 = sphi %s1856_s20, %s15_s20   ;;  %s1810_s19 = sphi %s1854_s19, %s2148_s19   ;;  %s1806_s18 = sphi %s1852_s18, %s2147_s18  }
   0x3   : > { %p29_p1 = scmp.ge.s32.totalorder %s27_s21, 2  ;;  %p219_p2 = scmp.lt.s32.totalorder %s1814_s20, 3 }
   0x5   : > { %s2150_s21 = smov (%p29_p1, %s27_s21), 0  ;;  %p220_p3 = pnand %p1526_p0, %p219_p2 }
   0x6   : > { %p258_p4 = scmp.lt.s32.totalorder (!%p220_p3), %s1806_s18, 1  ;;  %s1818_s13 = smov (!%p220_p3), 32  }
   0x7   : > { %223 = sbr.rel (%p220_p3) target bundleno = 5600 (0x15e0), region = 40  ;;  %s1819_s14 = smov (!%p220_p3), 96  }
   0x8   : > { %s1820_s15 = smov (!%p220_p3), 64  }
   0xc   : > { %vm306_vm0 = vcmask 1045504   ;;  %v1816_v0 = vmov 0.0   ;;  %v1727_v1 = vld [vmem:[%s2143_s2] sm:$0x3f]   ;;  %v1878_v2 = vld [vmem:[%s2145_s4 + $0x18] sm:$0xff]  ;;  %vm1817_vm1 = vmmov 0  }
   0xd   : > { %1601 = vmatprep.subr.bf16.mxu0 %v1816_v0  ;;  %1607 = vmatprep.subr.mxu1 %v1816_v0  ;;  %v1886_v3 = vld [vmem:[%s2145_s4 + $0x10] sm:$0xff]  ;;  %vm284_vm2 = vcmask 253952   ;;  %v308_v4 = vsel %vm306_vm0, %v1727_v1, 0  ;;  %s2152_s18 = smov (!%p258_p4, %s1806_s18), 1  ;;  %v1894_v5 = vld [vmem:[%s2145_s4 + $0x8] sm:$0xff]  ;;  %vm302_vm3 = vcmask 97280  }
   0xe   : > { %1603 = vmatprep.mubr.msk.bf16.mxu0 %vm1817_vm1, %v1816_v0  ;;  %1608 = vmatpush3.msra.mxu1 %v1878_v2  ;;  %285 = vst.msk [vmem:[#allocation3] sm:$0x1] %vm284_vm2, %v1816_v0  ;;  %286 = vst.msk [vmem:[#allocation4] sm:$0x1] %vm284_vm2, %v1816_v0  ;;  %s1527_s30 = sshll.u32 %s2152_s18, 2  ;;  %v1908_v6 = vld [vmem:[%s2145_s4] sm:$0xff] }
   0xf   : > { %1609 = vmatprep.subr.mxu1 %v1816_v0  ;;  %1615 = vmatprep.mubr.msk.f32.mxu1 %vm1817_vm1, %v1816_v0  ;;  %s264_s10 = scalar_lea.vmem %s2141_s0, %s1527_s30  ;;  %vm357_vm4 = vcmask 261120   ;;  %v1530_v9 = vld [vmem:[%s2144_s3] ss:$0 sm:$0xff]  ;;  %s1528_s16 = sshll.u32 %s2152_s18, 3 }
  0x10   : > { %1602 = vmatpush3.bf16.msra.mxu0 %v308_v4  ;;  %1610 = vmatpush3.msra.mxu1 %v1886_v3  ;;  %v287_v7 = vld [vmem:[%s264_s10] sm:$0xf]  ;;  %s2076_s23 = scalar_lea.vmem %s2142_s1, %s1528_s16  ;;  %s2093_s25 = scalar_lea.vmem %s2146_s5, %s1528_s16 }
  0x11   : > { %1611 = vmatprep.subr.mxu1 %v1816_v0  ;;  %1618 = vmatprep.subr.mxu0 %v1816_v0 }
  0x12   : > { %1612 = vmatpush3.msra.mxu1 %v1894_v5 }
  0x13   : > { %1613 = vmatprep.subr.mxu1 %v1816_v0  ;;  %1604 = vmatmul.mubr.msk.bf16.vlgmr.msra.gmra.mxu0 %vm302_vm3, %v287_v7 }
  0x14   : > { %1614 = vmatpush3.msra.mxu1 %v1908_v6  ;;  %1619 = vmatpush3.msra.mxu0 %v1878_v2 }
  0x15   : > { %1626 = vmatprep.mubr.msk.f32.mxu0 %vm1817_vm1, %v1816_v0  ;;  %v352_v8 = vld [vmem:[#allocation3] sm:$0x1]  ;;  %1620 = vmatprep.subr.mxu0 %v1816_v0  ;;  %v1535_v20 = vld [vmem:[#allocation4] ss:$0 sm:$0xff] }
  0x16   : > { %1629 = vmatprep.subr.mxu1 %v1816_v0  ;;  %1616 = vmatmul.mubr.msk.f32.vlgmr.msra.gmra.mxu1 %vm357_vm4, %v352_v8 }
  0x17   : > { %1621 = vmatpush3.msra.mxu0 %v1886_v3  ;;  %1630 = vmatpush3.msra.mxu1 %v1878_v2 }
  0x18   : > { %1622 = vmatprep.subr.mxu0 %v1816_v0  ;;  %1631 = vmatprep.subr.mxu1 %v1816_v0 }
  0x19   : > { %1623 = vmatpush3.msra.mxu0 %v1894_v5  ;;  %1632 = vmatpush3.msra.mxu1 %v1886_v3 }
  0x1a   : > { %1624 = vmatprep.subr.mxu0 %v1816_v0  ;;  %1633 = vmatprep.subr.mxu1 %v1816_v0 }
  0x1b   : > { %1625 = vmatpush3.msra.mxu0 %v1908_v6  ;;  %1634 = vmatpush3.msra.mxu1 %v1894_v5 }
  0x1c   : > { %1637 = vmatprep.mubr.msk.f32.mxu1 %vm1817_vm1, %v1816_v0  ;;  %1635 = vmatprep.subr.mxu1 %v1816_v0 }
  0x1d   : > { %1640 = vmatprep.subr.mxu0 %v1816_v0  ;;  %1636 = vmatpush3.msra.mxu1 %v1908_v6 }
  0x1e   : > { %1651 = vmatprep.subr.mxu1 %v1816_v0 }
  0xd3   : > { %v344_v10 = vpop.f32.mrf.mxu0 }
  0xd4   : > { %v345_v11 = vadd.f32 %v1530_v9, %v344_v10 }
  0xd5   : > { %v1605_v12 = vpop.f32.mrf.mxu0 }
  0xd6   : > { %350 = vst [vmem:[#allocation2] sm:$0xff] %v345_v11  ;;  %v427_v13 = vpop.f32.mrf.mxu1 }
  0xd7   : > { %v347_v14 = vpop.f32.mrf.mxu0 }
  0xd8   : > { %v1617_v15 = vpop.f32.mrf.mxu1 }
  0xd9   : > { %v1606_v16 = vpop.f32.mrf.mxu0 }
  0xdd   : > { %v351_v17 = vld [vmem:[#allocation2] sm:$0x1]  ;;  %v488_v38 = vld [vmem:[#allocation2 + $0x1] sm:$0x1]  ;;  %v623_v60 = vld [vmem:[#allocation2 + $0x2] sm:$0x1] }
  0xde   : > { %v431_v18 = vadd.f32 %v427_v13, %v351_v17 }
  0xe0   : > { %1728 = vtanh.f32 %v431_v18  ;;  %v1534_v21 = vmul.f32 -1.442695, %v431_v18 }
  0xe2   : > { %1730 = vpow2.f32 %v1534_v21 }
  0xed   : > { %v1729_v19 = vpop.eup %1728 }
  0xee   : > { %450 = vrot.lane.b32.xlu0 %v1729_v19, %s1818_s13 }
  0xef   : > { %v1731_v22 = vpop.eup %1730 }
  0xf0   : > { %v435_v23 = vadd.f32 1.0, %v1731_v22 }
  0xf2   : > { %445 = vrot.lane.b32.xlu0 %v1535_v20, %s1818_s13  ;;  %1732 = vrcp.f32 %v435_v23  ;;  %v758_v23 = vld [vmem:[#allocation2 + $0x3] sm:$0x1] }
  0xff   : > { %v1733_v24 = vpop.eup %1732 }
 0x160   : > { %v451_v25 = vpop.permute.xlu0 %450 }
 0x161   : > { %v453_v26 = vmul.f32 %v1733_v24, %v451_v25 }
 0x163   : > { %455 = vrot.lane.b32.xlu1 %v453_v26, %s1818_s13 }
 0x164   : > { %v446_v27 = vpop.permute.xlu0 %445 }
 0x165   : > { %v448_v28 = vmul.f32 %v1733_v24, %v446_v27 }
 0x1d5   : > { %v456_v29 = vpop.permute.xlu1 %455 }
 0x1d6   : > { %v458_v30 = vadd.f32 %v456_v29, %v448_v28 }
 0x1d8   : > { %1734 = vtanh.f32 %v458_v30 }
 0x1e5   : > { %v1735_v31 = vpop.eup %1734 }
 0x1e6   : > { %461 = vrot.lane.b32.xlu1 %v1735_v31, %s1818_s13 }
 0x1ea   : > { %466 = vrot.lane.b32.xlu1 %v458_v30, %s1819_s14 }
 0x258   : > { %v462_v32 = vpop.permute.xlu1 %461 }
 0x259   : > { %v1947_v33 = vmul.f32 %v1733_v24, %v462_v32 }
 0x25b   : > { %472 = vrot.lane.b32.xlu0 %v1947_v33, %s1820_s15 }
 0x25c   : > { %v467_v34 = vpop.permute.xlu1 %466 }
 0x25d   : > { %470 = vst.msk [vmem:[#allocation4] sm:$0x1] %vm284_vm2, %v467_v34 }
 0x264   : > { %v1538_v35 = vld [vmem:[#allocation4] ss:$0 sm:$0xff] }
 0x265   : > { %581 = vrot.lane.b32.xlu1 %v1538_v35, %s1818_s13 }
 0x2cd   : > { %v473_v36 = vpop.permute.xlu0 %472 }
 0x2ce   : > { %475 = vst.msk [vmem:[#allocation3] sm:$0x1] %vm284_vm2, %v473_v36 }
 0x2d5   : > { %v489_v37 = vld [vmem:[#allocation3] sm:$0x1] }
 0x2d6   : > { %1627 = vmatmul.mubr.msk.f32.vlgmr.msra.gmra.mxu0 %vm357_vm4, %v489_v37 }
 0x2d7   : > { %1641 = vmatpush3.msra.mxu0 %v1878_v2  ;;  %1648 = vmatprep.mubr.msk.f32.mxu0 %vm1817_vm1, %v1816_v0  ;;  %v582_v49 = vpop.permute.xlu1 %581 }
 0x2d8   : > { %1642 = vmatprep.subr.mxu0 %v1816_v0 }
 0x2d9   : > { %1643 = vmatpush3.msra.mxu0 %v1886_v3 }
 0x2da   : > { %1644 = vmatprep.subr.mxu0 %v1816_v0 }
 0x2db   : > { %1645 = vmatpush3.msra.mxu0 %v1894_v5 }
 0x2dc   : > { %1646 = vmatprep.subr.mxu0 %v1816_v0 }
 0x2dd   : > { %1647 = vmatpush3.msra.mxu0 %v1908_v6 }
 0x2de   : > { %1662 = vmatprep.subr.mxu0 %v1816_v0 }
 0x396   : > { %v563_v39 = vpop.f32.mrf.mxu0 }
 0x397   : > { %v567_v40 = vadd.f32 %v563_v39, %v488_v38 }
 0x398   : > { %v1628_v41 = vpop.f32.mrf.mxu0 }
 0x399   : > { %1736 = vtanh.f32 %v567_v40  ;;  %v1537_v43 = vmul.f32 -1.442695, %v567_v40 }
 0x39b   : > { %1738 = vpow2.f32 %v1537_v43 }
 0x3a6   : > { %v1737_v42 = vpop.eup %1736 }
 0x3a7   : > { %586 = vrot.lane.b32.xlu0 %v1737_v42, %s1818_s13 }
 0x3a8   : > { %v1739_v44 = vpop.eup %1738 }
 0x3a9   : > { %v571_v45 = vadd.f32 1.0, %v1739_v44 }
 0x3ab   : > { %1740 = vrcp.f32 %v571_v45 }
 0x3b8   : > { %v1741_v46 = vpop.eup %1740 }
 0x3b9   : > { %v584_v50 = vmul.f32 %v1741_v46, %v582_v49 }
 0x419   : > { %v587_v47 = vpop.permute.xlu0 %586 }
 0x41a   : > { %v589_v48 = vmul.f32 %v1741_v46, %v587_v47 }
 0x41c   : > { %591 = vrot.lane.b32.xlu0 %v589_v48, %s1818_s13 }
 0x48e   : > { %v592_v51 = vpop.permute.xlu0 %591 }
 0x48f   : > { %v594_v52 = vadd.f32 %v592_v51, %v584_v50 }
 0x491   : > { %1742 = vtanh.f32 %v594_v52 }
 0x49e   : > { %v1743_v53 = vpop.eup %1742 }
 0x49f   : > { %597 = vrot.lane.b32.xlu1 %v1743_v53, %s1818_s13 }
 0x4a3   : > { %602 = vrot.lane.b32.xlu1 %v594_v52, %s1819_s14 }
 0x511   : > { %v598_v54 = vpop.permute.xlu1 %597 }
 0x512   : > { %v1969_v55 = vmul.f32 %v1741_v46, %v598_v54  ;;  %v893_v46 = vld [vmem:[#allocation2 + $0x4] sm:$0x1] }
 0x514   : > { %607 = vrot.lane.b32.xlu0 %v1969_v55, %s1820_s15 }
 0x515   : > { %v603_v56 = vpop.permute.xlu1 %602 }
 0x516   : > { %605 = vst.msk [vmem:[#allocation4] sm:$0x1] %vm284_vm2, %v603_v56 }
 0x51d   : > { %v1541_v57 = vld [vmem:[#allocation4] ss:$0 sm:$0xff] }
 0x51e   : > { %716 = vrot.lane.b32.xlu1 %v1541_v57, %s1818_s13 }
 0x586   : > { %v608_v58 = vpop.permute.xlu0 %607 }
 0x587   : > { %610 = vst.msk [vmem:[#allocation3] sm:$0x1] %vm284_vm2, %v608_v58 }
 0x58e   : > { %v624_v59 = vld [vmem:[#allocation3] sm:$0x1] }
 0x58f   : > { %1638 = vmatmul.mubr.msk.f32.vlgmr.msra.gmra.mxu1 %vm357_vm4, %v624_v59 }
 0x590   : > { %1652 = vmatpush3.msra.mxu1 %v1878_v2  ;;  %1659 = vmatprep.mubr.msk.f32.mxu1 %vm1817_vm1, %v1816_v0  ;;  %v717_v12 = vpop.permute.xlu1 %716 }
 0x591   : > { %1653 = vmatprep.subr.mxu1 %v1816_v0 }
 0x592   : > { %1654 = vmatpush3.msra.mxu1 %v1886_v3 }
 0x593   : > { %1655 = vmatprep.subr.mxu1 %v1816_v0 }
 0x594   : > { %1656 = vmatpush3.msra.mxu1 %v1894_v5 }
 0x595   : > { %1657 = vmatprep.subr.mxu1 %v1816_v0 }
 0x596   : > { %1658 = vmatpush3.msra.mxu1 %v1908_v6 }
 0x597   : > { %1673 = vmatprep.subr.mxu1 %v1816_v0 }
 0x64f   : > { %v698_v61 = vpop.f32.mrf.mxu1 }
 0x650   : > { %v702_v62 = vadd.f32 %v698_v61, %v623_v60 }
 0x651   : > { %v1639_v63 = vpop.f32.mrf.mxu1 }
 0x652   : > { %1744 = vtanh.f32 %v702_v62  ;;  %v1540_v4 = vmul.f32 -1.442695, %v702_v62 }
 0x654   : > { %1746 = vpow2.f32 %v1540_v4 }
 0x65f   : > { %v1745_v1 = vpop.eup %1744 }
 0x660   : > { %721 = vrot.lane.b32.xlu0 %v1745_v1, %s1818_s13 }
 0x661   : > { %v1747_v7 = vpop.eup %1746 }
 0x662   : > { %v706_v8 = vadd.f32 1.0, %v1747_v7 }
 0x664   : > { %1748 = vrcp.f32 %v706_v8 }
 0x671   : > { %v1749_v9 = vpop.eup %1748 }
 0x672   : > { %v719_v13 = vmul.f32 %v1749_v9, %v717_v12 }
 0x6d2   : > { %v722_v10 = vpop.permute.xlu0 %721 }
 0x6d3   : > { %v724_v11 = vmul.f32 %v1749_v9, %v722_v10  ;;  %v1028_v10 = vld [vmem:[#allocation2 + $0x5] sm:$0x1] }
 0x6d5   : > { %726 = vrot.lane.b32.xlu0 %v724_v11, %s1818_s13 }
 0x747   : > { %v727_v14 = vpop.permute.xlu0 %726 }
 0x748   : > { %v729_v15 = vadd.f32 %v727_v14, %v719_v13 }
 0x74a   : > { %1750 = vtanh.f32 %v729_v15 }
 0x757   : > { %v1751_v16 = vpop.eup %1750 }
 0x758   : > { %732 = vrot.lane.b32.xlu1 %v1751_v16, %s1818_s13 }
 0x75c   : > { %737 = vrot.lane.b32.xlu1 %v729_v15, %s1819_s14 }
 0x7ca   : > { %v733_v17 = vpop.permute.xlu1 %732 }
 0x7cb   : > { %v1991_v18 = vmul.f32 %v1749_v9, %v733_v17 }
 0x7cd   : > { %742 = vrot.lane.b32.xlu0 %v1991_v18, %s1820_s15 }
 0x7ce   : > { %v738_v19 = vpop.permute.xlu1 %737 }
 0x7cf   : > { %740 = vst.msk [vmem:[#allocation4] sm:$0x1] %vm284_vm2, %v738_v19 }
 0x7d6   : > { %v1544_v20 = vld [vmem:[#allocation4] ss:$0 sm:$0xff] }
 0x7d7   : > { %851 = vrot.lane.b32.xlu1 %v1544_v20, %s1818_s13 }
 0x83f   : > { %v743_v21 = vpop.permute.xlu0 %742 }
 0x840   : > { %745 = vst.msk [vmem:[#allocation3] sm:$0x1] %vm284_vm2, %v743_v21 }
 0x847   : > { %v759_v22 = vld [vmem:[#allocation3] sm:$0x1] }
 0x848   : > { %1649 = vmatmul.mubr.msk.f32.vlgmr.msra.gmra.mxu0 %vm357_vm4, %v759_v22 }
 0x849   : > { %1663 = vmatpush3.msra.mxu0 %v1878_v2  ;;  %1670 = vmatprep.mubr.msk.f32.mxu0 %vm1817_vm1, %v1816_v0  ;;  %v852_v35 = vpop.permute.xlu1 %851 }
 0x84a   : > { %1664 = vmatprep.subr.mxu0 %v1816_v0 }
 0x84b   : > { %1665 = vmatpush3.msra.mxu0 %v1886_v3 }
 0x84c   : > { %1666 = vmatprep.subr.mxu0 %v1816_v0 }
 0x84d   : > { %1667 = vmatpush3.msra.mxu0 %v1894_v5 }
 0x84e   : > { %1668 = vmatprep.subr.mxu0 %v1816_v0 }
 0x84f   : > { %1669 = vmatpush3.msra.mxu0 %v1908_v6 }
 0x850   : > { %1684 = vmatprep.subr.mxu0 %v1816_v0 }
 0x908   : > { %v833_v24 = vpop.f32.mrf.mxu0 }
 0x909   : > { %v837_v25 = vadd.f32 %v833_v24, %v758_v23 }
 0x90a   : > { %v1650_v26 = vpop.f32.mrf.mxu0 }
 0x90b   : > { %1752 = vtanh.f32 %v837_v25  ;;  %v1543_v28 = vmul.f32 -1.442695, %v837_v25 }
 0x90d   : > { %1754 = vpow2.f32 %v1543_v28  ;;  %v1163_v28 = vld [vmem:[#allocation2 + $0x6] sm:$0x1] }
 0x918   : > { %v1753_v27 = vpop.eup %1752 }
 0x919   : > { %856 = vrot.lane.b32.xlu0 %v1753_v27, %s1818_s13 }
 0x91a   : > { %v1755_v29 = vpop.eup %1754 }
 0x91b   : > { %v841_v30 = vadd.f32 1.0, %v1755_v29 }
 0x91d   : > { %1756 = vrcp.f32 %v841_v30 }
 0x92a   : > { %v1757_v31 = vpop.eup %1756 }
 0x92b   : > { %v854_v36 = vmul.f32 %v1757_v31, %v852_v35 }
 0x98b   : > { %v857_v32 = vpop.permute.xlu0 %856 }
 0x98c   : > { %v859_v34 = vmul.f32 %v1757_v31, %v857_v32 }
 0x98e   : > { %861 = vrot.lane.b32.xlu0 %v859_v34, %s1818_s13 }
 0xa00   : > { %v862_v37 = vpop.permute.xlu0 %861 }
 0xa01   : > { %v864_v38 = vadd.f32 %v862_v37, %v854_v36 }
 0xa03   : > { %1758 = vtanh.f32 %v864_v38 }
 0xa10   : > { %v1759_v39 = vpop.eup %1758 }
 0xa11   : > { %867 = vrot.lane.b32.xlu1 %v1759_v39, %s1818_s13 }
 0xa15   : > { %872 = vrot.lane.b32.xlu1 %v864_v38, %s1819_s14 }
 0xa83   : > { %v868_v40 = vpop.permute.xlu1 %867 }
 0xa84   : > { %v2013_v41 = vmul.f32 %v1757_v31, %v868_v40 }
 0xa86   : > { %877 = vrot.lane.b32.xlu0 %v2013_v41, %s1820_s15 }
 0xa87   : > { %v873_v42 = vpop.permute.xlu1 %872 }
 0xa88   : > { %875 = vst.msk [vmem:[#allocation4] sm:$0x1] %vm284_vm2, %v873_v42 }
 0xa8f   : > { %v1547_v43 = vld [vmem:[#allocation4] ss:$0 sm:$0xff] }
 0xa90   : > { %986 = vrot.lane.b32.xlu1 %v1547_v43, %s1818_s13 }
 0xaf8   : > { %v878_v44 = vpop.permute.xlu0 %877 }
 0xaf9   : > { %880 = vst.msk [vmem:[#allocation3] sm:$0x1] %vm284_vm2, %v878_v44 }
 0xb00   : > { %v894_v45 = vld [vmem:[#allocation3] sm:$0x1] }
 0xb01   : > { %1660 = vmatmul.mubr.msk.f32.vlgmr.msra.gmra.mxu1 %vm357_vm4, %v894_v45 }
 0xb02   : > { %1674 = vmatpush3.msra.mxu1 %v1878_v2  ;;  %1681 = vmatprep.mubr.msk.f32.mxu1 %vm1817_vm1, %v1816_v0  ;;  %v987_v58 = vpop.permute.xlu1 %986 }
 0xb03   : > { %1675 = vmatprep.subr.mxu1 %v1816_v0 }
 0xb04   : > { %1676 = vmatpush3.msra.mxu1 %v1886_v3 }
 0xb05   : > { %1677 = vmatprep.subr.mxu1 %v1816_v0 }
 0xb06   : > { %1678 = vmatpush3.msra.mxu1 %v1894_v5 }
 0xb07   : > { %1679 = vmatprep.subr.mxu1 %v1816_v0 }
 0xb08   : > { %1680 = vmatpush3.msra.mxu1 %v1908_v6 }
 0xbc1   : > { %v968_v47 = vpop.f32.mrf.mxu1 }
 0xbc2   : > { %v972_v48 = vadd.f32 %v968_v47, %v893_v46  ;;  %v1821_v46 = vmov 0  }
 0xbc3   : > { %v1661_v49 = vpop.f32.mrf.mxu1  ;;  %1726 = vset.pattern.permute.xlu0 %v1821_v46  ;;  %1725 = vset.pattern.permute.xlu1 %v1821_v46 }
 0xbc4   : > { %1760 = vtanh.f32 %v972_v48  ;;  %v1546_v51 = vmul.f32 -1.442695, %v972_v48 }
 0xbc6   : > { %1762 = vpow2.f32 %v1546_v51  ;;  %v476_v51 = vld [vmem:[%s2076_s23] sm:$0x1] }
 0xbd1   : > { %v1761_v50 = vpop.eup %1760 }
 0xbd2   : > { %991 = vrot.lane.b32.xlu0 %v1761_v50, %s1818_s13 }
 0xbd3   : > { %v1763_v52 = vpop.eup %1762 }
 0xbd4   : > { %v976_v53 = vadd.f32 1.0, %v1763_v52  ;;  %v746_v52 = vld [vmem:[%s2076_s23 + $0x2] sm:$0x1] }
 0xbd6   : > { %1764 = vrcp.f32 %v976_v53  ;;  %v881_v53 = vld [vmem:[%s2076_s23 + $0x3] sm:$0x1] }
 0xbe3   : > { %v1765_v54 = vpop.eup %1764 }
 0xbe4   : > { %v989_v59 = vmul.f32 %v1765_v54, %v987_v58 }
 0xc44   : > { %v992_v56 = vpop.permute.xlu0 %991 }
 0xc45   : > { %v994_v57 = vmul.f32 %v1765_v54, %v992_v56  ;;  %v1421_v56 = vld [vmem:[%s2076_s23 + $0x7] sm:$0x1] }
 0xc47   : > { %996 = vrot.lane.b32.xlu0 %v994_v57, %s1818_s13 }
 0xcb9   : > { %v997_v60 = vpop.permute.xlu0 %996 }
 0xcba   : > { %v999_v61 = vadd.f32 %v997_v60, %v989_v59 }
 0xcbc   : > { %1766 = vtanh.f32 %v999_v61 }
 0xcc9   : > { %v1767_v62 = vpop.eup %1766 }
 0xcca   : > { %1002 = vrot.lane.b32.xlu1 %v1767_v62, %s1818_s13 }
 0xcce   : > { %1007 = vrot.lane.b32.xlu1 %v999_v61, %s1819_s14 }
 0xd3c   : > { %v1003_v63 = vpop.permute.xlu1 %1002 }
 0xd3d   : > { %v2034_v1 = vmul.f32 %v1765_v54, %v1003_v63  ;;  %v1151_v54 = vld [vmem:[%s2076_s23 + $0x5] sm:$0x1] }
 0xd3f   : > { %1012 = vrot.lane.b32.xlu0 %v2034_v1, %s1820_s15 }
 0xd40   : > { %v1008_v4 = vpop.permute.xlu1 %1007 }
 0xd41   : > { %1010 = vst.msk [vmem:[#allocation4] sm:$0x1] %vm284_vm2, %v1008_v4 }
 0xd48   : > { %v1550_v7 = vld [vmem:[#allocation4] ss:$0 sm:$0xff] }
 0xd49   : > { %1121 = vrot.lane.b32.xlu1 %v1550_v7, %s1818_s13 }
 0xdb1   : > { %v1013_v8 = vpop.permute.xlu0 %1012 }
 0xdb2   : > { %1015 = vst.msk [vmem:[#allocation3] sm:$0x1] %vm284_vm2, %v1013_v8 }
 0xdb9   : > { %v1029_v9 = vld [vmem:[#allocation3] sm:$0x1] }
 0xdba   : > { %1671 = vmatmul.mubr.msk.f32.vlgmr.msra.gmra.mxu0 %vm357_vm4, %v1029_v9 }
 0xdbb   : > { %1685 = vmatpush3.msra.mxu0 %v1878_v2  ;;  %1692 = vmatprep.mubr.msk.f32.mxu0 %vm1817_vm1, %v1816_v0 }
 0xdbc   : > { %1686 = vmatprep.subr.mxu0 %v1816_v0 }
 0xdbd   : > { %1687 = vmatpush3.msra.mxu0 %v1886_v3 }
 0xdbe   : > { %1688 = vmatprep.subr.mxu0 %v1816_v0 }
 0xdbf   : > { %1689 = vmatpush3.msra.mxu0 %v1894_v5 }
 0xdc0   : > { %1690 = vmatprep.subr.mxu0 %v1816_v0  ;;  %v1122_v0 = vpop.permute.xlu1 %1121 }
 0xdc1   : > { %1691 = vmatpush3.msra.mxu0 %v1908_v6 }
 0xe7a   : > { %v1103_v11 = vpop.f32.mrf.mxu0 }
 0xe7b   : > { %v1107_v12 = vadd.f32 %v1103_v11, %v1028_v10  ;;  %v1298_v10 = vld [vmem:[#allocation2 + $0x7] sm:$0x1] }
 0xe7c   : > { %v1672_v13 = vpop.f32.mrf.mxu0 }
 0xe7d   : > { %1768 = vtanh.f32 %v1107_v12  ;;  %v1549_v14 = vmul.f32 -1.442695, %v1107_v12 }
 0xe7f   : > { %1770 = vpow2.f32 %v1549_v14 }
 0xe8a   : > { %v1769_v2 = vpop.eup %1768 }
 0xe8b   : > { %1126 = vrot.lane.b32.xlu0 %v1769_v2, %s1818_s13 }
 0xe8c   : > { %v1771_v15 = vpop.eup %1770 }
 0xe8d   : > { %v1111_v3 = vadd.f32 1.0, %v1771_v15 }
 0xe8f   : > { %1772 = vrcp.f32 %v1111_v3 }
 0xe9c   : > { %v1773_v16 = vpop.eup %1772 }
 0xe9d   : > { %v1124_v6 = vmul.f32 %v1773_v16, %v1122_v0  ;;  %v1016_v0 = vld [vmem:[%s2076_s23 + $0x4] sm:$0x1] }
 0xefd   : > { %v1127_v17 = vpop.permute.xlu0 %1126 }
 0xefe   : > { %v1129_v5 = vmul.f32 %v1773_v16, %v1127_v17 }
 0xf00   : > { %1131 = vrot.lane.b32.xlu0 %v1129_v5, %s1818_s13  ;;  %v611_v5 = vld [vmem:[%s2076_s23 + $0x1] sm:$0x1] }
 0xf72   : > { %v1132_v19 = vpop.permute.xlu0 %1131 }
 0xf73   : > { %v1134_v20 = vadd.f32 %v1132_v19, %v1124_v6  ;;  %v1286_v6 = vld [vmem:[%s2076_s23 + $0x6] sm:$0x1] }
 0xf75   : > { %1774 = vtanh.f32 %v1134_v20 }
 0xf82   : > { %v1775_v21 = vpop.eup %1774 }
 0xf83   : > { %1137 = vrot.lane.b32.xlu1 %v1775_v21, %s1818_s13 }
 0xf87   : > { %1142 = vrot.lane.b32.xlu1 %v1134_v20, %s1819_s14 }
 0xff5   : > { %v1138_v22 = vpop.permute.xlu1 %1137 }
 0xff6   : > { %v2055_v23 = vmul.f32 %v1773_v16, %v1138_v22 }
 0xff8   : > { %1147 = vrot.lane.b32.xlu0 %v2055_v23, %s1820_s15 }
 0xff9   : > { %v1143_v24 = vpop.permute.xlu1 %1142 }
 0xffa   : > { %1145 = vst.msk [vmem:[#allocation4] sm:$0x1] %vm284_vm2, %v1143_v24 }
0x1001   : > { %v1553_v25 = vld [vmem:[#allocation4] ss:$0 sm:$0xff] }
0x1002   : > { %1256 = vrot.lane.b32.xlu1 %v1553_v25, %s1818_s13 }
0x106a   : > { %v1148_v26 = vpop.permute.xlu0 %1147 }
0x106b   : > { %1150 = vst.msk [vmem:[#allocation3] sm:$0x1] %vm284_vm2, %v1148_v26 }
0x1072   : > { %v1164_v27 = vld [vmem:[#allocation3] sm:$0x1] }
0x1073   : > { %1682 = vmatmul.mubr.msk.f32.vlgmr.msra.gmra.mxu1 %vm357_vm4, %v1164_v27 }
0x1074   : > { %v1257_v40 = vpop.permute.xlu1 %1256 }
0x1133   : > { %v1238_v29 = vpop.f32.mrf.mxu1 }
0x1134   : > { %v1242_v30 = vadd.f32 %v1238_v29, %v1163_v28 }
0x1135   : > { %v1683_v31 = vpop.f32.mrf.mxu1 }
0x1136   : > { %1776 = vtanh.f32 %v1242_v30  ;;  %v1552_v34 = vmul.f32 -1.442695, %v1242_v30 }
0x1138   : > { %1778 = vpow2.f32 %v1552_v34 }
0x1143   : > { %v1777_v32 = vpop.eup %1776 }
0x1144   : > { %1261 = vrot.lane.b32.xlu0 %v1777_v32, %s1818_s13 }
0x1145   : > { %v1779_v35 = vpop.eup %1778 }
0x1146   : > { %v1246_v36 = vadd.f32 1.0, %v1779_v35 }
0x1148   : > { %1780 = vrcp.f32 %v1246_v36 }
0x1155   : > { %v1781_v37 = vpop.eup %1780 }
0x1156   : > { %v1259_v42 = vmul.f32 %v1781_v37, %v1257_v40 }
0x11b6   : > { %v1262_v38 = vpop.permute.xlu0 %1261 }
0x11b7   : > { %v1264_v39 = vmul.f32 %v1781_v37, %v1262_v38 }
0x11b9   : > { %1266 = vrot.lane.b32.xlu0 %v1264_v39, %s1818_s13 }
0x122b   : > { %v1267_v43 = vpop.permute.xlu0 %1266 }
0x122c   : > { %v1269_v44 = vadd.f32 %v1267_v43, %v1259_v42 }
0x122e   : > { %1782 = vtanh.f32 %v1269_v44 }
0x123b   : > { %v1783_v45 = vpop.eup %1782 }
0x123c   : > { %1272 = vrot.lane.b32.xlu1 %v1783_v45, %s1818_s13 }
0x1240   : > { %1277 = vrot.lane.b32.xlu1 %v1269_v44, %s1819_s14 }
0x12ae   : > { %v1273_v47 = vpop.permute.xlu1 %1272 }
0x12af   : > { %v2067_v48 = vmul.f32 %v1781_v37, %v1273_v47 }
0x12b1   : > { %1282 = vrot.lane.b32.xlu0 %v2067_v48, %s1820_s15 }
0x12b2   : > { %v1278_v49 = vpop.permute.xlu1 %1277 }
0x12b3   : > { %1280 = vst.msk [vmem:[#allocation4] sm:$0x1] %vm284_vm2, %v1278_v49 }
0x12ba   : > { %v1556_v50 = vld [vmem:[#allocation4] ss:$0 sm:$0xff] }
0x12bb   : > { %1391 = vrot.lane.b32.xlu1 %v1556_v50, %s1818_s13 }
0x12bf   : > { %479 = vperm.xlu1 %1725, %v476_v51  }
0x12c3   : > { %749 = vperm.xlu1 %1725, %v746_v52  }
0x12c7   : > { %884 = vperm.xlu1 %1725, %v881_v53  }
0x12cb   : > { %1154 = vperm.xlu1 %1725, %v1151_v54  }
0x12cf   : > { %1424 = vperm.xlu1 %1725, %v1421_v56  }
0x1323   : > { %v1283_v57 = vpop.permute.xlu0 %1282 }
0x1324   : > { %1285 = vst.msk [vmem:[#allocation3] sm:$0x1] %vm284_vm2, %v1283_v57 }
0x132b   : > { %v1299_v58 = vld [vmem:[#allocation3] sm:$0x1] }
0x132c   : > { %1693 = vmatmul.mubr.msk.f32.vlgmr.msra.gmra.mxu0 %vm357_vm4, %v1299_v58 }
0x132d   : > { %v1392_v59 = vpop.permute.xlu1 %1391 }
0x133a   : > { %v480_v60 = vpop.permute.xlu1 %479 }
0x133b   : > { %v482_v61 = vmul.f32 %v480_v60, %v1947_v33 }
0x133d   : > { %484 = vrot.lane.b32.xlu1 %v482_v61, %s1820_s15 }
0x133e   : > { %v750_v62 = vpop.permute.xlu1 %749 }
0x133f   : > { %v752_v63 = vmul.f32 %v750_v62, %v1991_v18 }
0x1341   : > { %754 = vrot.lane.b32.xlu1 %v752_v63, %s1820_s15 }
0x1342   : > { %v885_v4 = vpop.permute.xlu1 %884 }
0x1343   : > { %v887_v30 = vmul.f32 %v885_v4, %v2013_v41 }
0x1346   : > { %v1155_v7 = vpop.permute.xlu1 %1154 }
0x134a   : > { %v1425_v8 = vpop.permute.xlu1 %1424 }
0x13af   : > { %v485_v9 = vpop.permute.xlu1 %484 }
0x13b0   : > { %487 = vst.msk [vmem:[%s2093_s25] sm:$0x1] %vm284_vm2, %v485_v9 }
0x13b3   : > { %v755_v33 = vpop.permute.xlu1 %754 }
0x13b4   : > { %757 = vst.msk [vmem:[%s2093_s25 + $0x2] sm:$0x1] %vm284_vm2, %v755_v33 }
0x13ec   : > { %v1373_v18 = vpop.f32.mrf.mxu0 }
0x13ed   : > { %v1377_v11 = vadd.f32 %v1373_v18, %v1298_v10 }
0x13ee   : > { %v1694_v12 = vpop.f32.mrf.mxu0 }
0x13ef   : > { %1784 = vtanh.f32 %v1377_v11  ;;  %v1555_v2 = vmul.f32 -1.442695, %v1377_v11 }
0x13f1   : > { %1786 = vpow2.f32 %v1555_v2 }
0x13fc   : > { %v1785_v13 = vpop.eup %1784 }
0x13fd   : > { %1396 = vrot.lane.b32.xlu0 %v1785_v13, %s1818_s13 }
0x13fe   : > { %v1787_v14 = vpop.eup %1786 }
0x13ff   : > { %v1381_v15 = vadd.f32 1.0, %v1787_v14 }
0x1401   : > { %1788 = vrcp.f32 %v1381_v15 }
0x140e   : > { %v1789_v3 = vpop.eup %1788 }
0x140f   : > { %v1394_v19 = vmul.f32 %v1789_v3, %v1392_v59 }
0x146f   : > { %v1397_v16 = vpop.permute.xlu0 %1396 }
0x1470   : > { %v1399_v17 = vmul.f32 %v1789_v3, %v1397_v16 }
0x1472   : > { %1401 = vrot.lane.b32.xlu0 %v1399_v17, %s1818_s13 }
0x1476   : > { %614 = vperm.xlu0 %1726, %v611_v5  }
0x147a   : > { %1019 = vperm.xlu0 %1726, %v1016_v0  }
0x147e   : > { %1289 = vperm.xlu0 %1726, %v1286_v6  }
0x14e4   : > { %v1402_v20 = vpop.permute.xlu0 %1401 }
0x14e5   : > { %v1404_v21 = vadd.f32 %v1402_v20, %v1394_v19 }
0x14e7   : > { %1790 = vtanh.f32 %v1404_v21 }
0x14f1   : > { %v615_v22 = vpop.permute.xlu0 %614 }
0x14f2   : > { %v617_v27 = vmul.f32 %v615_v22, %v1969_v55 }
0x14f4   : > { %v1791_v24 = vpop.eup %1790 }
0x14f5   : > { %v1020_v25 = vpop.permute.xlu0 %1019  ;;  %1407 = vrot.lane.b32.xlu0 %v1791_v24, %s1818_s13 }
0x14f6   : > { %v1022_v26 = vmul.f32 %v1020_v25, %v2034_v1  ;;  %v1157_v1 = vmul.f32 %v1155_v7, %v2055_v23 }
0x14f8   : > { %1024 = vrot.lane.b32.xlu1 %v1022_v26, %s1820_s15 }
0x14f9   : > { %v1290_v28 = vpop.permute.xlu0 %1289  ;;  %619 = vrot.lane.b32.xlu0 %v617_v27, %s1820_s15 }
0x14fa   : > { %v1292_v29 = vmul.f32 %v1290_v28, %v2067_v48 }
0x14fc   : > { %1294 = vrot.lane.b32.xlu1 %v1292_v29, %s1820_s15 }
0x14fd   : > { %889 = vrot.lane.b32.xlu0 %v887_v30, %s1820_s15 }
0x1501   : > { %1159 = vrot.lane.b32.xlu0 %v1157_v1, %s1820_s15 }
0x1505   : > { %1412 = vrot.lane.b32.xlu0 %v1404_v21, %s1819_s14 }
0x1567   : > { %v1408_v55 = vpop.permute.xlu0 %1407 }
0x1568   : > { %v1410_v31 = vmul.f32 %v1789_v3, %v1408_v55 }
0x156a   : > { %v1427_v32 = vmul.f32 %v1425_v8, %v1410_v31  ;;  %v1025_v34 = vpop.permute.xlu1 %1024  ;;  %1417 = vrot.lane.b32.xlu1 %v1410_v31, %s1820_s15 }
0x156b   : > { %1027 = vst.msk [vmem:[%s2093_s25 + $0x4] sm:$0x1] %vm284_vm2, %v1025_v34  ;;  %v620_v41 = vpop.permute.xlu0 %619 }
0x156c   : > { %622 = vst.msk [vmem:[%s2093_s25 + $0x1] sm:$0x1] %vm284_vm2, %v620_v41  ;;  %1429 = vrot.lane.b32.xlu0 %v1427_v32, %s1820_s15 }
0x156e   : > { %v1295_v23 = vpop.permute.xlu1 %1294 }
0x156f   : > { %1297 = vst.msk [vmem:[%s2093_s25 + $0x6] sm:$0x1] %vm284_vm2, %v1295_v23  ;;  %v890_v35 = vpop.permute.xlu0 %889 }
0x1570   : > { %892 = vst.msk [vmem:[%s2093_s25 + $0x3] sm:$0x1] %vm284_vm2, %v890_v35 }
0x1573   : > { %v1160_v36 = vpop.permute.xlu0 %1159 }
0x1574   : > { %1162 = vst.msk [vmem:[%s2093_s25 + $0x5] sm:$0x1] %vm284_vm2, %v1160_v36 }
0x1577   : > { %v1413_v37 = vpop.permute.xlu0 %1412 }
0x1578   : > { %1415 = vst.msk [vmem:[#allocation4] sm:$0x1] %vm284_vm2, %v1413_v37 }
0x15dc   : > { %v1418_v38 = vpop.permute.xlu1 %1417 }
0x15dd   : > { %1420 = vst.msk [vmem:[#allocation3] sm:$0x1] %vm284_vm2, %v1418_v38 }
0x15de   : > { %v1430_v39 = vpop.permute.xlu0 %1429 }
0x15df   : > { %1432 = vst.msk [vmem:[%s2093_s25 + $0x7] sm:$0x1] %vm284_vm2, %v1430_v39 }
0x15e0 PF: > { %s15_s20 = sadd.s32 1, %s1814_s20   ;;  %s2147_s18 = smov %s1810_s19 }
0x15e1   : > { %p12_p5 = scmp.ge.s32.totalorder %s15_s20, 4   ;;  %s2148_s19 = smov %s2150_s21 }
0x15e3   :  { %14 = sbr.rel (!%p12_p5) target bundleno = 2 (0x2), region = 77 }

</bundles_post_ra>
